<compile_context>
chip_gen: v7x
topology: tpu7x:2x2x1
jax: 0.10.0
libtpu: 0.0.40
codegen_flags: <defaults>
</compile_context>

<pallas_src>
import functools

import jax
import jax.numpy as jnp
from jax.experimental import pallas as pl
from jax.experimental.pallas import tpu as pltpu


def _make_kernel(num_hidden, batch, input_size, output_size,
                 past_length, future_length, use_embedding):
    H = num_hidden
    H2 = H // 2
    H3 = 3 * H
    B = batch
    bf16 = jnp.bfloat16

    def kernel(*refs):
        it = iter(refs)
        nxt = lambda: next(it)

        ctx_ref = nxt()                                  # (B, H) f32
        dla_ref = nxt() if use_embedding else None       # (B, H2) f32
        wce_ref = nxt()                                  # (H, H2) bf16
        wih_ref = nxt()                                  # (H2, 6H) bf16 [dec1 r|z|n , dec2 r|z|n]
        wihd_ref = nxt() if use_embedding else None      # (H2, 3H) bf16 (dla half of dec2 W_ih)
        whh1_ref = nxt()                                 # (H, 3H) bf16
        whh2_ref = nxt()                                 # (H, 3H) bf16
        wfi_ref = nxt()                                  # (H, input_size) bf16
        wfo_ref = nxt()                                  # (H, output_size) bf16
        grub_ref = nxt()                                 # (2, 4H) f32
        linb_ref = nxt()                                 # (1, H2+in+out) f32
        dec_ref = nxt()                                  # (past_length*B, input_size) f32
        out_ref = nxt()                                  # (future_length*B, output_size) f32

        ctx = ctx_ref[...]                               # (B, H) f32
        linb = linb_ref[...]
        b_ce = linb[:, 0:H2]
        b_fi = linb[:, H2:H2 + input_size]
        b_fo = linb[:, H2 + input_size:H2 + input_size + output_size]
        grub = grub_ref[...]                             # (2, 4H)

        # context_encoder + ReLU (bf16 operands, f32 accumulation).
        enc = jnp.maximum(
            jnp.dot(ctx.astype(bf16), wce_ref[...],
                    preferred_element_type=jnp.float32) + b_ce, 0.0)   # (B, H2)
        enc_bf = enc.astype(bf16)

        # Hoisted loop-invariant input-side gate pre-activations for BOTH
        # decoders in a single fused matmul.  b_ih (all gates) and b_hh_{r,z}
        # are already folded into grub rows; b_hh_n must stay inside
        # r * (h @ W_n + b_hh_n).
        gi_both = jnp.dot(enc_bf, wih_ref[...],
                          preferred_element_type=jnp.float32)          # (B, 6H)
        gi1 = gi_both[:, 0:H3] + grub[0:1, 0:H3]
        gi2 = gi_both[:, H3:2 * H3] + grub[1:2, 0:H3]
        if use_embedding:
            # concat([enc, dla]) @ W == enc @ W_enc + dla @ W_dla
            gi2 = gi2 + jnp.dot(dla_ref[...].astype(bf16), wihd_ref[...],
                                preferred_element_type=jnp.float32)

        gi1_r, gi1_z, gi1_n = gi1[:, 0:H], gi1[:, H:2 * H], gi1[:, 2 * H:H3]
        gi2_r, gi2_z, gi2_n = gi2[:, 0:H], gi2[:, H:2 * H], gi2[:, 2 * H:H3]

        # Pre-broadcast b_hh_n once per decoder (JAX does not CSE
        # broadcast_in_dim; keep it out of the unrolled loops).
        bhn1 = jnp.broadcast_to(grub[0:1, H3:4 * H], (B, H))
        bhn2 = jnp.broadcast_to(grub[1:2, H3:4 * H], (B, H))

        W1 = whh1_ref[...]
        W2 = whh2_ref[...]

        # ---------- decoder1: reconstruct the past (fully unrolled) ----------
        # One fused (B,H)@(H,3H) MXU matmul per step on the serial chain.
        h_t = ctx
        hs1 = []
        for _ in range(past_length):
            gh = jnp.dot(h_t.astype(bf16), W1,
                         preferred_element_type=jnp.float32)            # (B, 3H)
            r = jax.nn.sigmoid(gi1_r + gh[:, 0:H])
            z = jax.nn.sigmoid(gi1_z + gh[:, H:2 * H])
            n = jnp.tanh(gi1_n + r * (gh[:, 2 * H:H3] + bhn1))
            h_t = (1.0 - z) * n + z * h_t
            hs1.append(h_t)

        # ---------- decoder2: predict the future (independent of decoder1,
        # same basic block so its steps interleave into decoder1's gaps) -----
        h_t2 = ctx
        hs2 = []
        for _ in range(future_length):
            gh = jnp.dot(h_t2.astype(bf16), W2,
                         preferred_element_type=jnp.float32)
            r = jax.nn.sigmoid(gi2_r + gh[:, 0:H])
            z = jax.nn.sigmoid(gi2_z + gh[:, H:2 * H])
            n = jnp.tanh(gi2_n + r * (gh[:, 2 * H:H3] + bhn2))
            h_t2 = (1.0 - z) * n + z * h_t2
            hs2.append(jnp.maximum(h_t2, 0.0))   # relu_output feeds fc_out only

        # ---------- batched output projections, one 2-D slab store each -----
        h_all1 = jnp.concatenate(hs1, axis=0).astype(bf16)               # (T1*B, H)
        dec_ref[...] = (jnp.dot(h_all1, wfi_ref[...],
                                preferred_element_type=jnp.float32) + b_fi)

        h_all2 = jnp.concatenate(hs2, axis=0).astype(bf16)               # (T2*B, H)
        out_ref[...] = (jnp.dot(h_all2, wfo_ref[...],
                                preferred_element_type=jnp.float32) + b_fo)

    return kernel


def init_params(key, input_size, output_size, num_hidden, use_embedding=False):
    """Deterministic synthetic parameters in PyTorch layout conventions."""
    H = num_hidden
    H2 = H // 2
    h_in2 = H if use_embedding else H2
    keys = jax.random.split(key, 14)

    def unif(k, shape, fan):
        bound = 1.0 / jnp.sqrt(jnp.float32(fan))
        return jax.random.uniform(k, shape, jnp.float32, -bound, bound)

    return dict(
        # decoder1 = GRUCell(H/2 -> H):  weight_ih (3H, H/2), weight_hh (3H, H)
        w_ih1=unif(keys[0], (3 * H, H2), H),
        w_hh1=unif(keys[1], (3 * H, H), H),
        b_ih1=unif(keys[2], (3 * H,), H),
        b_hh1=unif(keys[3], (3 * H,), H),
        # decoder2 = GRUCell(h_in2 -> H)
        w_ih2=unif(keys[4], (3 * H, h_in2), H),
        w_hh2=unif(keys[5], (3 * H, H), H),
        b_ih2=unif(keys[6], (3 * H,), H),
        b_hh2=unif(keys[7], (3 * H,), H),
        # fc_in: Linear(H -> input_size)
        w_fi=unif(keys[8], (input_size, H), H),
        b_fi=unif(keys[9], (input_size,), H),
        # fc_out: Linear(H -> output_size)
        w_fo=unif(keys[10], (output_size, H), H),
        b_fo=unif(keys[11], (output_size,), H),
        # context_encoder: Linear(H -> H/2)
        w_ce=unif(keys[12], (H2, H), H),
        b_ce=unif(keys[13], (H2,), H),
    )


def prepare_params(params, num_hidden, use_embedding=False):
    """One-time host-side weight prep (call once, reuse across forwards):
       - transpose weights to (in, out), cast matmul weights to bf16,
       - concatenate per-gate GRU weights into (in, 3H) [r|z|n] matrices,
       - fuse decoder1/decoder2 input-side weights into one (H/2, 6H) matrix,
       - split decoder2's input weight into enc/dla halves (no in-kernel concat),
       - fold b_ih (all gates) + b_hh_{r,z} per decoder; keep b_hh_n separate,
         packed as one (2, 4H) f32 array,
       - pack the three Linear biases into one row.
    """
    H = num_hidden
    H2 = H // 2
    f32, bf16 = jnp.float32, jnp.bfloat16

    def gate_cat_T(w):   # (3H, in) -> (in, 3H), columns ordered [r | z | n]
        w = jnp.asarray(w, f32)
        return jnp.concatenate([w[g * H:(g + 1) * H].T for g in range(3)], axis=1)

    wih1 = gate_cat_T(params['w_ih1'])        # (H2, 3H)
    whh1 = gate_cat_T(params['w_hh1'])        # (H, 3H)
    wih2_full = gate_cat_T(params['w_ih2'])   # (h_in2, 3H)
    whh2 = gate_cat_T(params['w_hh2'])        # (H, 3H)

    if use_embedding:
        wih2_enc, wih2_dla = wih2_full[:H2], wih2_full[H2:]
    else:
        wih2_enc, wih2_dla = wih2_full, None

    w_ih_both = jnp.concatenate([wih1, wih2_enc], axis=1)   # (H2, 6H)

    def fold_bias(b_ih, b_hh):   # -> (1, 4H): [bi_r+bh_r, bi_z+bh_z, bi_n, bh_n]
        bi = jnp.asarray(b_ih, f32)
        bh = jnp.asarray(b_hh, f32)
        row = jnp.concatenate([bi[0:H] + bh[0:H],
                               bi[H:2 * H] + bh[H:2 * H],
                               bi[2 * H:3 * H],
                               bh[2 * H:3 * H]])
        return row.reshape(1, 4 * H)

    gru_b = jnp.concatenate([fold_bias(params['b_ih1'], params['b_hh1']),
                             fold_bias(params['b_ih2'], params['b_hh2'])], axis=0)

    lin_b = jnp.concatenate([jnp.asarray(params['b_ce'], f32),
                             jnp.asarray(params['b_fi'], f32),
                             jnp.asarray(params['b_fo'], f32)]).reshape(1, -1)

    prepped = dict(
        w_ce=jnp.asarray(params['w_ce'], f32).T.astype(bf16),
        w_ih_both=w_ih_both.astype(bf16),
        w_ih2_dla=(wih2_dla.astype(bf16) if use_embedding else None),
        w_hh1=whh1.astype(bf16),
        w_hh2=whh2.astype(bf16),
        w_fi=jnp.asarray(params['w_fi'], f32).T.astype(bf16),
        w_fo=jnp.asarray(params['w_fo'], f32).T.astype(bf16),
        gru_b=gru_b,
        lin_b=lin_b,
    )
    # Force materialization once so per-call work is only the kernel.
    return jax.device_put(prepped)


@functools.partial(
    jax.jit,
    static_argnames=("num_hidden", "input_size", "output_size",
                     "use_embedding", "future_length", "past_length"))
def decoder_rnn_forward(prepped, context, dla_features=None, *,
                        num_hidden, input_size, output_size,
                        use_embedding=False, future_length=5, past_length=10):
    B = context.shape[0]

    args = [context.astype(jnp.float32)]
    if use_embedding:
        args.append(dla_features.astype(jnp.float32))
    args += [prepped['w_ce'], prepped['w_ih_both']]
    if use_embedding:
        args.append(prepped['w_ih2_dla'])
    args += [prepped['w_hh1'], prepped['w_hh2'], prepped['w_fi'],
             prepped['w_fo'], prepped['gru_b'], prepped['lin_b']]

    kernel = _make_kernel(num_hidden, B, input_size, output_size,
                          past_length, future_length, use_embedding)

    # Outputs are produced as 2-D (T*B, F) slabs (no in-kernel reshape).
    out_shape = (
        jax.ShapeDtypeStruct((past_length * B, input_size), jnp.float32),
        jax.ShapeDtypeStruct((future_length * B, output_size), jnp.float32),
    )
    vmem = lambda: pl.BlockSpec(memory_space=pltpu.MemorySpace.VMEM)

    dec2d, out2d = pl.pallas_call(
        kernel,
        out_shape=out_shape,
        in_specs=[vmem() for _ in args],
        out_specs=(vmem(), vmem()),
    )(*args)

    # (T*B, F) -> (B, T, F) to match torch.stack(..., dim=1); fuses under jit.
    decoded_inputs = dec2d.reshape(past_length, B, input_size).transpose(1, 0, 2)
    outputs = out2d.reshape(future_length, B, output_size).transpose(1, 0, 2)
    return [decoded_inputs, outputs]


def reference_forward(params, context, dla_features=None, *,
                      use_embedding=False, future_length=5, past_length=10):
    """Pure-JAX f32 reference mirroring the PyTorch forward, for verification."""
    def gru(x, h, w_ih, w_hh, b_ih, b_hh):
        gi = x @ w_ih.T + b_ih
        gh = h @ w_hh.T + b_hh
        i_r, i_z, i_n = jnp.split(gi, 3, axis=1)
        h_r, h_z, h_n = jnp.split(gh, 3, axis=1)
        r = jax.nn.sigmoid(i_r + h_r)
        z = jax.nn.sigmoid(i_z + h_z)
        n = jnp.tanh(i_n + r * h_n)
        return (1.0 - z) * n + z * h

    enc = jax.nn.relu(context @ params['w_ce'].T + params['b_ce'])
    h_t = context
    dec = []
    for _ in range(past_length):
        h_t = gru(enc, h_t, params['w_ih1'], params['w_hh1'],
                  params['b_ih1'], params['b_hh1'])
        dec.append(h_t @ params['w_fi'].T + params['b_fi'])
    dec = jnp.stack(dec, 1)

    dec2_in = (jnp.concatenate([enc, dla_features], 1)
               if use_embedding else enc)
    h_t = context
    outs = []
    for _ in range(future_length):
        h_t = gru(dec2_in, h_t, params['w_ih2'], params['w_hh2'],
                  params['b_ih2'], params['b_hh2'])
        outs.append(jax.nn.relu(h_t) @ params['w_fo'].T + params['b_fo'])
    outs = jnp.stack(outs, 1)
    return [dec, outs]


if __name__ == "__main__":
    B = 8
    num_hidden = 32
    input_size = 4
    output_size = 6
    past_length = 10
    future_length = 5

    key = jax.random.PRNGKey(0)
    k_param, k_ctx, k_dla = jax.random.split(key, 3)
    context = jax.random.normal(k_ctx, (B, num_hidden), jnp.float32)
    dla_features = jax.random.normal(k_dla, (B, num_hidden // 2), jnp.float32)

    for use_embedding in (False, True):
        params = init_params(k_param, input_size, output_size, num_hidden,
                             use_embedding=use_embedding)
        prepped = prepare_params(params, num_hidden,
                                 use_embedding=use_embedding)

        decoded_inputs, outputs = decoder_rnn_forward(
            prepped, context,
            dla_features if use_embedding else None,
            num_hidden=num_hidden, input_size=input_size,
            output_size=output_size, use_embedding=use_embedding,
            future_length=future_length, past_length=past_length)
        jax.block_until_ready((decoded_inputs, outputs))

        ref_dec, ref_out = reference_forward(
            params, context,
            dla_features if use_embedding else None,
            use_embedding=use_embedding,
            future_length=future_length, past_length=past_length)

        assert decoded_inputs.shape == (B, past_length, input_size)
        assert outputs.shape == (B, future_length, output_size)
        # Relaxed tolerance: bf16 MXU operands (f32 accumulation) compound a
        # small rounding error over the 10/5 recurrent steps.
        assert jnp.allclose(decoded_inputs, ref_dec, atol=3e-2, rtol=3e-2)
        assert jnp.allclose(outputs, ref_out, atol=3e-2, rtol=3e-2)

    print("KERNEL_OK")
</pallas_src>

<mosaic_0001>
module attributes {stable_mosaic.version = 11 : i64} {
  func.func @kernel(%arg0: memref<8x32xf32, #tpu.memory_space<vmem>>, %arg1: memref<32x16xbf16, #tpu.memory_space<vmem>>, %arg2: memref<16x192xbf16, #tpu.memory_space<vmem>>, %arg3: memref<32x96xbf16, #tpu.memory_space<vmem>>, %arg4: memref<32x96xbf16, #tpu.memory_space<vmem>>, %arg5: memref<32x4xbf16, #tpu.memory_space<vmem>>, %arg6: memref<32x6xbf16, #tpu.memory_space<vmem>>, %arg7: memref<2x128xf32, #tpu.memory_space<vmem>>, %arg8: memref<1x26xf32, #tpu.memory_space<vmem>>, %arg9: memref<80x4xf32, #tpu.memory_space<vmem>>, %arg10: memref<40x6xf32, #tpu.memory_space<vmem>>) attributes {dimension_semantics = [], scalar_prefetch = 0 : i64, scratch_operands = 0 : i64, tpu.core_type = #tpu.core_type<tc>} {
    %c0 = arith.constant 0 : index
    %c0_0 = arith.constant 0 : index
    %0 = vector.load %arg0[%c0, %c0_0] : memref<8x32xf32, #tpu.memory_space<vmem>>, vector<8x32xf32>
    %c0_1 = arith.constant 0 : index
    %c0_2 = arith.constant 0 : index
    %1 = vector.load %arg8[%c0_1, %c0_2] : memref<1x26xf32, #tpu.memory_space<vmem>>, vector<1x26xf32>
    %2 = vector.extract_strided_slice %1 {offsets = [0, 0], sizes = [1, 16], strides = [1, 1]} : vector<1x26xf32> to vector<1x16xf32>
    %3 = vector.extract_strided_slice %1 {offsets = [0, 16], sizes = [1, 4], strides = [1, 1]} : vector<1x26xf32> to vector<1x4xf32>
    %4 = vector.extract_strided_slice %1 {offsets = [0, 20], sizes = [1, 6], strides = [1, 1]} : vector<1x26xf32> to vector<1x6xf32>
    %c0_3 = arith.constant 0 : index
    %c0_4 = arith.constant 0 : index
    %5 = vector.load %arg7[%c0_3, %c0_4] : memref<2x128xf32, #tpu.memory_space<vmem>>, vector<2x128xf32>
    %6 = arith.truncf %0 : vector<8x32xf32> to vector<8x32xbf16>
    %c0_5 = arith.constant 0 : index
    %c0_6 = arith.constant 0 : index
    %7 = vector.load %arg1[%c0_5, %c0_6] : memref<32x16xbf16, #tpu.memory_space<vmem>>, vector<32x16xbf16>
    %cst = arith.constant dense<0.000000e+00> : vector<8x16xf32>
    %8 = tpu.matmul %6, %7, %cst {dimension_numbers = #tpu.dot_dimension_numbers<[1], [0], [0], [1], [0, 0, 1, 1], [], []>} : vector<8x32xbf16>, vector<32x16xbf16>, vector<8x16xf32> -> vector<8x16xf32>
    %9 = vector.broadcast %2 : vector<1x16xf32> to vector<8x16xf32>
    %10 = arith.addf %8, %9 : vector<8x16xf32>
    %cst_7 = arith.constant 0.000000e+00 : f32
    %11 = vector.broadcast %cst_7 : f32 to vector<8x16xf32>
    %12 = arith.maximumf %10, %11 : vector<8x16xf32>
    %13 = arith.truncf %12 : vector<8x16xf32> to vector<8x16xbf16>
    %c0_8 = arith.constant 0 : index
    %c0_9 = arith.constant 0 : index
    %14 = vector.load %arg2[%c0_8, %c0_9] : memref<16x192xbf16, #tpu.memory_space<vmem>>, vector<16x192xbf16>
    %cst_10 = arith.constant dense<0.000000e+00> : vector<8x192xf32>
    %15 = tpu.matmul %13, %14, %cst_10 {dimension_numbers = #tpu.dot_dimension_numbers<[1], [0], [0], [1], [0, 0, 1, 1], [], []>} : vector<8x16xbf16>, vector<16x192xbf16>, vector<8x192xf32> -> vector<8x192xf32>
    %16 = vector.extract_strided_slice %15 {offsets = [0, 0], sizes = [8, 96], strides = [1, 1]} : vector<8x192xf32> to vector<8x96xf32>
    %17 = vector.extract_strided_slice %5 {offsets = [0, 0], sizes = [1, 96], strides = [1, 1]} : vector<2x128xf32> to vector<1x96xf32>
    %18 = vector.broadcast %17 : vector<1x96xf32> to vector<8x96xf32>
    %19 = arith.addf %16, %18 : vector<8x96xf32>
    %20 = vector.extract_strided_slice %15 {offsets = [0, 96], sizes = [8, 96], strides = [1, 1]} : vector<8x192xf32> to vector<8x96xf32>
    %21 = vector.extract_strided_slice %5 {offsets = [1, 0], sizes = [1, 96], strides = [1, 1]} : vector<2x128xf32> to vector<1x96xf32>
    %22 = vector.broadcast %21 : vector<1x96xf32> to vector<8x96xf32>
    %23 = arith.addf %20, %22 : vector<8x96xf32>
    %24 = vector.extract_strided_slice %19 {offsets = [0, 0], sizes = [8, 32], strides = [1, 1]} : vector<8x96xf32> to vector<8x32xf32>
    %25 = vector.extract_strided_slice %19 {offsets = [0, 32], sizes = [8, 32], strides = [1, 1]} : vector<8x96xf32> to vector<8x32xf32>
    %26 = vector.extract_strided_slice %19 {offsets = [0, 64], sizes = [8, 32], strides = [1, 1]} : vector<8x96xf32> to vector<8x32xf32>
    %27 = vector.extract_strided_slice %23 {offsets = [0, 0], sizes = [8, 32], strides = [1, 1]} : vector<8x96xf32> to vector<8x32xf32>
    %28 = vector.extract_strided_slice %23 {offsets = [0, 32], sizes = [8, 32], strides = [1, 1]} : vector<8x96xf32> to vector<8x32xf32>
    %29 = vector.extract_strided_slice %23 {offsets = [0, 64], sizes = [8, 32], strides = [1, 1]} : vector<8x96xf32> to vector<8x32xf32>
    %30 = vector.extract_strided_slice %5 {offsets = [0, 96], sizes = [1, 32], strides = [1, 1]} : vector<2x128xf32> to vector<1x32xf32>
    %31 = vector.shape_cast %30 : vector<1x32xf32> to vector<1x32xf32>
    %32 = vector.broadcast %31 : vector<1x32xf32> to vector<8x32xf32>
    %33 = vector.extract_strided_slice %5 {offsets = [1, 96], sizes = [1, 32], strides = [1, 1]} : vector<2x128xf32> to vector<1x32xf32>
    %34 = vector.shape_cast %33 : vector<1x32xf32> to vector<1x32xf32>
    %35 = vector.broadcast %34 : vector<1x32xf32> to vector<8x32xf32>
    %c0_11 = arith.constant 0 : index
    %c0_12 = arith.constant 0 : index
    %36 = vector.load %arg3[%c0_11, %c0_12] : memref<32x96xbf16, #tpu.memory_space<vmem>>, vector<32x96xbf16>
    %c0_13 = arith.constant 0 : index
    %c0_14 = arith.constant 0 : index
    %37 = vector.load %arg4[%c0_13, %c0_14] : memref<32x96xbf16, #tpu.memory_space<vmem>>, vector<32x96xbf16>
    %38 = arith.truncf %0 : vector<8x32xf32> to vector<8x32xbf16>
    %cst_15 = arith.constant dense<0.000000e+00> : vector<8x96xf32>
    %39 = tpu.matmul %38, %36, %cst_15 {dimension_numbers = #tpu.dot_dimension_numbers<[1], [0], [0], [1], [0, 0, 1, 1], [], []>} : vector<8x32xbf16>, vector<32x96xbf16>, vector<8x96xf32> -> vector<8x96xf32>
    %40 = vector.extract_strided_slice %39 {offsets = [0, 0], sizes = [8, 32], strides = [1, 1]} : vector<8x96xf32> to vector<8x32xf32>
    %41 = arith.addf %24, %40 : vector<8x32xf32>
    %42 = arith.negf %41 : vector<8x32xf32>
    %43 = math.exp %42 : vector<8x32xf32>
    %cst_16 = arith.constant 1.000000e+00 : f32
    %44 = vector.broadcast %cst_16 : f32 to vector<8x32xf32>
    %45 = arith.addf %44, %43 : vector<8x32xf32>
    %46 = arith.divf %44, %45 : vector<8x32xf32>
    %47 = vector.extract_strided_slice %39 {offsets = [0, 32], sizes = [8, 32], strides = [1, 1]} : vector<8x96xf32> to vector<8x32xf32>
    %48 = arith.addf %25, %47 : vector<8x32xf32>
    %49 = arith.negf %48 : vector<8x32xf32>
    %50 = math.exp %49 : vector<8x32xf32>
    %cst_17 = arith.constant 1.000000e+00 : f32
    %51 = vector.broadcast %cst_17 : f32 to vector<8x32xf32>
    %52 = arith.addf %51, %50 : vector<8x32xf32>
    %53 = arith.divf %51, %52 : vector<8x32xf32>
    %54 = vector.extract_strided_slice %39 {offsets = [0, 64], sizes = [8, 32], strides = [1, 1]} : vector<8x96xf32> to vector<8x32xf32>
    %55 = arith.addf %54, %32 : vector<8x32xf32>
    %56 = arith.mulf %46, %55 : vector<8x32xf32>
    %57 = arith.addf %26, %56 : vector<8x32xf32>
    %58 = math.tanh %57 : vector<8x32xf32>
    %cst_18 = arith.constant 1.000000e+00 : f32
    %59 = vector.broadcast %cst_18 : f32 to vector<8x32xf32>
    %60 = arith.subf %59, %53 : vector<8x32xf32>
    %61 = arith.mulf %60, %58 : vector<8x32xf32>
    %62 = arith.mulf %53, %0 : vector<8x32xf32>
    %63 = arith.addf %61, %62 : vector<8x32xf32>
    %64 = arith.truncf %63 : vector<8x32xf32> to vector<8x32xbf16>
    %cst_19 = arith.constant dense<0.000000e+00> : vector<8x96xf32>
    %65 = tpu.matmul %64, %36, %cst_19 {dimension_numbers = #tpu.dot_dimension_numbers<[1], [0], [0], [1], [0, 0, 1, 1], [], []>} : vector<8x32xbf16>, vector<32x96xbf16>, vector<8x96xf32> -> vector<8x96xf32>
    %66 = vector.extract_strided_slice %65 {offsets = [0, 0], sizes = [8, 32], strides = [1, 1]} : vector<8x96xf32> to vector<8x32xf32>
    %67 = arith.addf %24, %66 : vector<8x32xf32>
    %68 = arith.negf %67 : vector<8x32xf32>
    %69 = math.exp %68 : vector<8x32xf32>
    %cst_20 = arith.constant 1.000000e+00 : f32
    %70 = vector.broadcast %cst_20 : f32 to vector<8x32xf32>
    %71 = arith.addf %70, %69 : vector<8x32xf32>
    %72 = arith.divf %70, %71 : vector<8x32xf32>
    %73 = vector.extract_strided_slice %65 {offsets = [0, 32], sizes = [8, 32], strides = [1, 1]} : vector<8x96xf32> to vector<8x32xf32>
    %74 = arith.addf %25, %73 : vector<8x32xf32>
    %75 = arith.negf %74 : vector<8x32xf32>
    %76 = math.exp %75 : vector<8x32xf32>
    %cst_21 = arith.constant 1.000000e+00 : f32
    %77 = vector.broadcast %cst_21 : f32 to vector<8x32xf32>
    %78 = arith.addf %77, %76 : vector<8x32xf32>
    %79 = arith.divf %77, %78 : vector<8x32xf32>
    %80 = vector.extract_strided_slice %65 {offsets = [0, 64], sizes = [8, 32], strides = [1, 1]} : vector<8x96xf32> to vector<8x32xf32>
    %81 = arith.addf %80, %32 : vector<8x32xf32>
    %82 = arith.mulf %72, %81 : vector<8x32xf32>
    %83 = arith.addf %26, %82 : vector<8x32xf32>
    %84 = math.tanh %83 : vector<8x32xf32>
    %cst_22 = arith.constant 1.000000e+00 : f32
    %85 = vector.broadcast %cst_22 : f32 to vector<8x32xf32>
    %86 = arith.subf %85, %79 : vector<8x32xf32>
    %87 = arith.mulf %86, %84 : vector<8x32xf32>
    %88 = arith.mulf %79, %63 : vector<8x32xf32>
    %89 = arith.addf %87, %88 : vector<8x32xf32>
    %90 = arith.truncf %89 : vector<8x32xf32> to vector<8x32xbf16>
    %cst_23 = arith.constant dense<0.000000e+00> : vector<8x96xf32>
    %91 = tpu.matmul %90, %36, %cst_23 {dimension_numbers = #tpu.dot_dimension_numbers<[1], [0], [0], [1], [0, 0, 1, 1], [], []>} : vector<8x32xbf16>, vector<32x96xbf16>, vector<8x96xf32> -> vector<8x96xf32>
    %92 = vector.extract_strided_slice %91 {offsets = [0, 0], sizes = [8, 32], strides = [1, 1]} : vector<8x96xf32> to vector<8x32xf32>
    %93 = arith.addf %24, %92 : vector<8x32xf32>
    %94 = arith.negf %93 : vector<8x32xf32>
    %95 = math.exp %94 : vector<8x32xf32>
    %cst_24 = arith.constant 1.000000e+00 : f32
    %96 = vector.broadcast %cst_24 : f32 to vector<8x32xf32>
    %97 = arith.addf %96, %95 : vector<8x32xf32>
    %98 = arith.divf %96, %97 : vector<8x32xf32>
    %99 = vector.extract_strided_slice %91 {offsets = [0, 32], sizes = [8, 32], strides = [1, 1]} : vector<8x96xf32> to vector<8x32xf32>
    %100 = arith.addf %25, %99 : vector<8x32xf32>
    %101 = arith.negf %100 : vector<8x32xf32>
    %102 = math.exp %101 : vector<8x32xf32>
    %cst_25 = arith.constant 1.000000e+00 : f32
    %103 = vector.broadcast %cst_25 : f32 to vector<8x32xf32>
    %104 = arith.addf %103, %102 : vector<8x32xf32>
    %105 = arith.divf %103, %104 : vector<8x32xf32>
    %106 = vector.extract_strided_slice %91 {offsets = [0, 64], sizes = [8, 32], strides = [1, 1]} : vector<8x96xf32> to vector<8x32xf32>
    %107 = arith.addf %106, %32 : vector<8x32xf32>
    %108 = arith.mulf %98, %107 : vector<8x32xf32>
    %109 = arith.addf %26, %108 : vector<8x32xf32>
    %110 = math.tanh %109 : vector<8x32xf32>
    %cst_26 = arith.constant 1.000000e+00 : f32
    %111 = vector.broadcast %cst_26 : f32 to vector<8x32xf32>
    %112 = arith.subf %111, %105 : vector<8x32xf32>
    %113 = arith.mulf %112, %110 : vector<8x32xf32>
    %114 = arith.mulf %105, %89 : vector<8x32xf32>
    %115 = arith.addf %113, %114 : vector<8x32xf32>
    %116 = arith.truncf %115 : vector<8x32xf32> to vector<8x32xbf16>
    %cst_27 = arith.constant dense<0.000000e+00> : vector<8x96xf32>
    %117 = tpu.matmul %116, %36, %cst_27 {dimension_numbers = #tpu.dot_dimension_numbers<[1], [0], [0], [1], [0, 0, 1, 1], [], []>} : vector<8x32xbf16>, vector<32x96xbf16>, vector<8x96xf32> -> vector<8x96xf32>
    %118 = vector.extract_strided_slice %117 {offsets = [0, 0], sizes = [8, 32], strides = [1, 1]} : vector<8x96xf32> to vector<8x32xf32>
    %119 = arith.addf %24, %118 : vector<8x32xf32>
    %120 = arith.negf %119 : vector<8x32xf32>
    %121 = math.exp %120 : vector<8x32xf32>
    %cst_28 = arith.constant 1.000000e+00 : f32
    %122 = vector.broadcast %cst_28 : f32 to vector<8x32xf32>
    %123 = arith.addf %122, %121 : vector<8x32xf32>
    %124 = arith.divf %122, %123 : vector<8x32xf32>
    %125 = vector.extract_strided_slice %117 {offsets = [0, 32], sizes = [8, 32], strides = [1, 1]} : vector<8x96xf32> to vector<8x32xf32>
    %126 = arith.addf %25, %125 : vector<8x32xf32>
    %127 = arith.negf %126 : vector<8x32xf32>
    %128 = math.exp %127 : vector<8x32xf32>
    %cst_29 = arith.constant 1.000000e+00 : f32
    %129 = vector.broadcast %cst_29 : f32 to vector<8x32xf32>
    %130 = arith.addf %129, %128 : vector<8x32xf32>
    %131 = arith.divf %129, %130 : vector<8x32xf32>
    %132 = vector.extract_strided_slice %117 {offsets = [0, 64], sizes = [8, 32], strides = [1, 1]} : vector<8x96xf32> to vector<8x32xf32>
    %133 = arith.addf %132, %32 : vector<8x32xf32>
    %134 = arith.mulf %124, %133 : vector<8x32xf32>
    %135 = arith.addf %26, %134 : vector<8x32xf32>
    %136 = math.tanh %135 : vector<8x32xf32>
    %cst_30 = arith.constant 1.000000e+00 : f32
    %137 = vector.broadcast %cst_30 : f32 to vector<8x32xf32>
    %138 = arith.subf %137, %131 : vector<8x32xf32>
    %139 = arith.mulf %138, %136 : vector<8x32xf32>
    %140 = arith.mulf %131, %115 : vector<8x32xf32>
    %141 = arith.addf %139, %140 : vector<8x32xf32>
    %142 = arith.truncf %141 : vector<8x32xf32> to vector<8x32xbf16>
    %cst_31 = arith.constant dense<0.000000e+00> : vector<8x96xf32>
    %143 = tpu.matmul %142, %36, %cst_31 {dimension_numbers = #tpu.dot_dimension_numbers<[1], [0], [0], [1], [0, 0, 1, 1], [], []>} : vector<8x32xbf16>, vector<32x96xbf16>, vector<8x96xf32> -> vector<8x96xf32>
    %144 = vector.extract_strided_slice %143 {offsets = [0, 0], sizes = [8, 32], strides = [1, 1]} : vector<8x96xf32> to vector<8x32xf32>
    %145 = arith.addf %24, %144 : vector<8x32xf32>
    %146 = arith.negf %145 : vector<8x32xf32>
    %147 = math.exp %146 : vector<8x32xf32>
    %cst_32 = arith.constant 1.000000e+00 : f32
    %148 = vector.broadcast %cst_32 : f32 to vector<8x32xf32>
    %149 = arith.addf %148, %147 : vector<8x32xf32>
    %150 = arith.divf %148, %149 : vector<8x32xf32>
    %151 = vector.extract_strided_slice %143 {offsets = [0, 32], sizes = [8, 32], strides = [1, 1]} : vector<8x96xf32> to vector<8x32xf32>
    %152 = arith.addf %25, %151 : vector<8x32xf32>
    %153 = arith.negf %152 : vector<8x32xf32>
    %154 = math.exp %153 : vector<8x32xf32>
    %cst_33 = arith.constant 1.000000e+00 : f32
    %155 = vector.broadcast %cst_33 : f32 to vector<8x32xf32>
    %156 = arith.addf %155, %154 : vector<8x32xf32>
    %157 = arith.divf %155, %156 : vector<8x32xf32>
    %158 = vector.extract_strided_slice %143 {offsets = [0, 64], sizes = [8, 32], strides = [1, 1]} : vector<8x96xf32> to vector<8x32xf32>
    %159 = arith.addf %158, %32 : vector<8x32xf32>
    %160 = arith.mulf %150, %159 : vector<8x32xf32>
    %161 = arith.addf %26, %160 : vector<8x32xf32>
    %162 = math.tanh %161 : vector<8x32xf32>
    %cst_34 = arith.constant 1.000000e+00 : f32
    %163 = vector.broadcast %cst_34 : f32 to vector<8x32xf32>
    %164 = arith.subf %163, %157 : vector<8x32xf32>
    %165 = arith.mulf %164, %162 : vector<8x32xf32>
    %166 = arith.mulf %157, %141 : vector<8x32xf32>
    %167 = arith.addf %165, %166 : vector<8x32xf32>
    %168 = arith.truncf %167 : vector<8x32xf32> to vector<8x32xbf16>
    %cst_35 = arith.constant dense<0.000000e+00> : vector<8x96xf32>
    %169 = tpu.matmul %168, %36, %cst_35 {dimension_numbers = #tpu.dot_dimension_numbers<[1], [0], [0], [1], [0, 0, 1, 1], [], []>} : vector<8x32xbf16>, vector<32x96xbf16>, vector<8x96xf32> -> vector<8x96xf32>
    %170 = vector.extract_strided_slice %169 {offsets = [0, 0], sizes = [8, 32], strides = [1, 1]} : vector<8x96xf32> to vector<8x32xf32>
    %171 = arith.addf %24, %170 : vector<8x32xf32>
    %172 = arith.negf %171 : vector<8x32xf32>
    %173 = math.exp %172 : vector<8x32xf32>
    %cst_36 = arith.constant 1.000000e+00 : f32
    %174 = vector.broadcast %cst_36 : f32 to vector<8x32xf32>
    %175 = arith.addf %174, %173 : vector<8x32xf32>
    %176 = arith.divf %174, %175 : vector<8x32xf32>
    %177 = vector.extract_strided_slice %169 {offsets = [0, 32], sizes = [8, 32], strides = [1, 1]} : vector<8x96xf32> to vector<8x32xf32>
    %178 = arith.addf %25, %177 : vector<8x32xf32>
    %179 = arith.negf %178 : vector<8x32xf32>
    %180 = math.exp %179 : vector<8x32xf32>
    %cst_37 = arith.constant 1.000000e+00 : f32
    %181 = vector.broadcast %cst_37 : f32 to vector<8x32xf32>
    %182 = arith.addf %181, %180 : vector<8x32xf32>
    %183 = arith.divf %181, %182 : vector<8x32xf32>
    %184 = vector.extract_strided_slice %169 {offsets = [0, 64], sizes = [8, 32], strides = [1, 1]} : vector<8x96xf32> to vector<8x32xf32>
    %185 = arith.addf %184, %32 : vector<8x32xf32>
    %186 = arith.mulf %176, %185 : vector<8x32xf32>
    %187 = arith.addf %26, %186 : vector<8x32xf32>
    %188 = math.tanh %187 : vector<8x32xf32>
    %cst_38 = arith.constant 1.000000e+00 : f32
    %189 = vector.broadcast %cst_38 : f32 to vector<8x32xf32>
    %190 = arith.subf %189, %183 : vector<8x32xf32>
    %191 = arith.mulf %190, %188 : vector<8x32xf32>
    %192 = arith.mulf %183, %167 : vector<8x32xf32>
    %193 = arith.addf %191, %192 : vector<8x32xf32>
    %194 = arith.truncf %193 : vector<8x32xf32> to vector<8x32xbf16>
    %cst_39 = arith.constant dense<0.000000e+00> : vector<8x96xf32>
    %195 = tpu.matmul %194, %36, %cst_39 {dimension_numbers = #tpu.dot_dimension_numbers<[1], [0], [0], [1], [0, 0, 1, 1], [], []>} : vector<8x32xbf16>, vector<32x96xbf16>, vector<8x96xf32> -> vector<8x96xf32>
    %196 = vector.extract_strided_slice %195 {offsets = [0, 0], sizes = [8, 32], strides = [1, 1]} : vector<8x96xf32> to vector<8x32xf32>
    %197 = arith.addf %24, %196 : vector<8x32xf32>
    %198 = arith.negf %197 : vector<8x32xf32>
    %199 = math.exp %198 : vector<8x32xf32>
    %cst_40 = arith.constant 1.000000e+00 : f32
    %200 = vector.broadcast %cst_40 : f32 to vector<8x32xf32>
    %201 = arith.addf %200, %199 : vector<8x32xf32>
    %202 = arith.divf %200, %201 : vector<8x32xf32>
    %203 = vector.extract_strided_slice %195 {offsets = [0, 32], sizes = [8, 32], strides = [1, 1]} : vector<8x96xf32> to vector<8x32xf32>
    %204 = arith.addf %25, %203 : vector<8x32xf32>
    %205 = arith.negf %204 : vector<8x32xf32>
    %206 = math.exp %205 : vector<8x32xf32>
    %cst_41 = arith.constant 1.000000e+00 : f32
    %207 = vector.broadcast %cst_41 : f32 to vector<8x32xf32>
    %208 = arith.addf %207, %206 : vector<8x32xf32>
    %209 = arith.divf %207, %208 : vector<8x32xf32>
    %210 = vector.extract_strided_slice %195 {offsets = [0, 64], sizes = [8, 32], strides = [1, 1]} : vector<8x96xf32> to vector<8x32xf32>
    %211 = arith.addf %210, %32 : vector<8x32xf32>
    %212 = arith.mulf %202, %211 : vector<8x32xf32>
    %213 = arith.addf %26, %212 : vector<8x32xf32>
    %214 = math.tanh %213 : vector<8x32xf32>
    %cst_42 = arith.constant 1.000000e+00 : f32
    %215 = vector.broadcast %cst_42 : f32 to vector<8x32xf32>
    %216 = arith.subf %215, %209 : vector<8x32xf32>
    %217 = arith.mulf %216, %214 : vector<8x32xf32>
    %218 = arith.mulf %209, %193 : vector<8x32xf32>
    %219 = arith.addf %217, %218 : vector<8x32xf32>
    %220 = arith.truncf %219 : vector<8x32xf32> to vector<8x32xbf16>
    %cst_43 = arith.constant dense<0.000000e+00> : vector<8x96xf32>
    %221 = tpu.matmul %220, %36, %cst_43 {dimension_numbers = #tpu.dot_dimension_numbers<[1], [0], [0], [1], [0, 0, 1, 1], [], []>} : vector<8x32xbf16>, vector<32x96xbf16>, vector<8x96xf32> -> vector<8x96xf32>
    %222 = vector.extract_strided_slice %221 {offsets = [0, 0], sizes = [8, 32], strides = [1, 1]} : vector<8x96xf32> to vector<8x32xf32>
    %223 = arith.addf %24, %222 : vector<8x32xf32>
    %224 = arith.negf %223 : vector<8x32xf32>
    %225 = math.exp %224 : vector<8x32xf32>
    %cst_44 = arith.constant 1.000000e+00 : f32
    %226 = vector.broadcast %cst_44 : f32 to vector<8x32xf32>
    %227 = arith.addf %226, %225 : vector<8x32xf32>
    %228 = arith.divf %226, %227 : vector<8x32xf32>
    %229 = vector.extract_strided_slice %221 {offsets = [0, 32], sizes = [8, 32], strides = [1, 1]} : vector<8x96xf32> to vector<8x32xf32>
    %230 = arith.addf %25, %229 : vector<8x32xf32>
    %231 = arith.negf %230 : vector<8x32xf32>
    %232 = math.exp %231 : vector<8x32xf32>
    %cst_45 = arith.constant 1.000000e+00 : f32
    %233 = vector.broadcast %cst_45 : f32 to vector<8x32xf32>
    %234 = arith.addf %233, %232 : vector<8x32xf32>
    %235 = arith.divf %233, %234 : vector<8x32xf32>
    %236 = vector.extract_strided_slice %221 {offsets = [0, 64], sizes = [8, 32], strides = [1, 1]} : vector<8x96xf32> to vector<8x32xf32>
    %237 = arith.addf %236, %32 : vector<8x32xf32>
    %238 = arith.mulf %228, %237 : vector<8x32xf32>
    %239 = arith.addf %26, %238 : vector<8x32xf32>
    %240 = math.tanh %239 : vector<8x32xf32>
    %cst_46 = arith.constant 1.000000e+00 : f32
    %241 = vector.broadcast %cst_46 : f32 to vector<8x32xf32>
    %242 = arith.subf %241, %235 : vector<8x32xf32>
    %243 = arith.mulf %242, %240 : vector<8x32xf32>
    %244 = arith.mulf %235, %219 : vector<8x32xf32>
    %245 = arith.addf %243, %244 : vector<8x32xf32>
    %246 = arith.truncf %245 : vector<8x32xf32> to vector<8x32xbf16>
    %cst_47 = arith.constant dense<0.000000e+00> : vector<8x96xf32>
    %247 = tpu.matmul %246, %36, %cst_47 {dimension_numbers = #tpu.dot_dimension_numbers<[1], [0], [0], [1], [0, 0, 1, 1], [], []>} : vector<8x32xbf16>, vector<32x96xbf16>, vector<8x96xf32> -> vector<8x96xf32>
    %248 = vector.extract_strided_slice %247 {offsets = [0, 0], sizes = [8, 32], strides = [1, 1]} : vector<8x96xf32> to vector<8x32xf32>
    %249 = arith.addf %24, %248 : vector<8x32xf32>
    %250 = arith.negf %249 : vector<8x32xf32>
    %251 = math.exp %250 : vector<8x32xf32>
    %cst_48 = arith.constant 1.000000e+00 : f32
    %252 = vector.broadcast %cst_48 : f32 to vector<8x32xf32>
    %253 = arith.addf %252, %251 : vector<8x32xf32>
    %254 = arith.divf %252, %253 : vector<8x32xf32>
    %255 = vector.extract_strided_slice %247 {offsets = [0, 32], sizes = [8, 32], strides = [1, 1]} : vector<8x96xf32> to vector<8x32xf32>
    %256 = arith.addf %25, %255 : vector<8x32xf32>
    %257 = arith.negf %256 : vector<8x32xf32>
    %258 = math.exp %257 : vector<8x32xf32>
    %cst_49 = arith.constant 1.000000e+00 : f32
    %259 = vector.broadcast %cst_49 : f32 to vector<8x32xf32>
    %260 = arith.addf %259, %258 : vector<8x32xf32>
    %261 = arith.divf %259, %260 : vector<8x32xf32>
    %262 = vector.extract_strided_slice %247 {offsets = [0, 64], sizes = [8, 32], strides = [1, 1]} : vector<8x96xf32> to vector<8x32xf32>
    %263 = arith.addf %262, %32 : vector<8x32xf32>
    %264 = arith.mulf %254, %263 : vector<8x32xf32>
    %265 = arith.addf %26, %264 : vector<8x32xf32>
    %266 = math.tanh %265 : vector<8x32xf32>
    %cst_50 = arith.constant 1.000000e+00 : f32
    %267 = vector.broadcast %cst_50 : f32 to vector<8x32xf32>
    %268 = arith.subf %267, %261 : vector<8x32xf32>
    %269 = arith.mulf %268, %266 : vector<8x32xf32>
    %270 = arith.mulf %261, %245 : vector<8x32xf32>
    %271 = arith.addf %269, %270 : vector<8x32xf32>
    %272 = arith.truncf %271 : vector<8x32xf32> to vector<8x32xbf16>
    %cst_51 = arith.constant dense<0.000000e+00> : vector<8x96xf32>
    %273 = tpu.matmul %272, %36, %cst_51 {dimension_numbers = #tpu.dot_dimension_numbers<[1], [0], [0], [1], [0, 0, 1, 1], [], []>} : vector<8x32xbf16>, vector<32x96xbf16>, vector<8x96xf32> -> vector<8x96xf32>
    %274 = vector.extract_strided_slice %273 {offsets = [0, 0], sizes = [8, 32], strides = [1, 1]} : vector<8x96xf32> to vector<8x32xf32>
    %275 = arith.addf %24, %274 : vector<8x32xf32>
    %276 = arith.negf %275 : vector<8x32xf32>
    %277 = math.exp %276 : vector<8x32xf32>
    %cst_52 = arith.constant 1.000000e+00 : f32
    %278 = vector.broadcast %cst_52 : f32 to vector<8x32xf32>
    %279 = arith.addf %278, %277 : vector<8x32xf32>
    %280 = arith.divf %278, %279 : vector<8x32xf32>
    %281 = vector.extract_strided_slice %273 {offsets = [0, 32], sizes = [8, 32], strides = [1, 1]} : vector<8x96xf32> to vector<8x32xf32>
    %282 = arith.addf %25, %281 : vector<8x32xf32>
    %283 = arith.negf %282 : vector<8x32xf32>
    %284 = math.exp %283 : vector<8x32xf32>
    %cst_53 = arith.constant 1.000000e+00 : f32
    %285 = vector.broadcast %cst_53 : f32 to vector<8x32xf32>
    %286 = arith.addf %285, %284 : vector<8x32xf32>
    %287 = arith.divf %285, %286 : vector<8x32xf32>
    %288 = vector.extract_strided_slice %273 {offsets = [0, 64], sizes = [8, 32], strides = [1, 1]} : vector<8x96xf32> to vector<8x32xf32>
    %289 = arith.addf %288, %32 : vector<8x32xf32>
    %290 = arith.mulf %280, %289 : vector<8x32xf32>
    %291 = arith.addf %26, %290 : vector<8x32xf32>
    %292 = math.tanh %291 : vector<8x32xf32>
    %cst_54 = arith.constant 1.000000e+00 : f32
    %293 = vector.broadcast %cst_54 : f32 to vector<8x32xf32>
    %294 = arith.subf %293, %287 : vector<8x32xf32>
    %295 = arith.mulf %294, %292 : vector<8x32xf32>
    %296 = arith.mulf %287, %271 : vector<8x32xf32>
    %297 = arith.addf %295, %296 : vector<8x32xf32>
    %298 = arith.truncf %0 : vector<8x32xf32> to vector<8x32xbf16>
    %cst_55 = arith.constant dense<0.000000e+00> : vector<8x96xf32>
    %299 = tpu.matmul %298, %37, %cst_55 {dimension_numbers = #tpu.dot_dimension_numbers<[1], [0], [0], [1], [0, 0, 1, 1], [], []>} : vector<8x32xbf16>, vector<32x96xbf16>, vector<8x96xf32> -> vector<8x96xf32>
    %300 = vector.extract_strided_slice %299 {offsets = [0, 0], sizes = [8, 32], strides = [1, 1]} : vector<8x96xf32> to vector<8x32xf32>
    %301 = arith.addf %27, %300 : vector<8x32xf32>
    %302 = arith.negf %301 : vector<8x32xf32>
    %303 = math.exp %302 : vector<8x32xf32>
    %cst_56 = arith.constant 1.000000e+00 : f32
    %304 = vector.broadcast %cst_56 : f32 to vector<8x32xf32>
    %305 = arith.addf %304, %303 : vector<8x32xf32>
    %306 = arith.divf %304, %305 : vector<8x32xf32>
    %307 = vector.extract_strided_slice %299 {offsets = [0, 32], sizes = [8, 32], strides = [1, 1]} : vector<8x96xf32> to vector<8x32xf32>
    %308 = arith.addf %28, %307 : vector<8x32xf32>
    %309 = arith.negf %308 : vector<8x32xf32>
    %310 = math.exp %309 : vector<8x32xf32>
    %cst_57 = arith.constant 1.000000e+00 : f32
    %311 = vector.broadcast %cst_57 : f32 to vector<8x32xf32>
    %312 = arith.addf %311, %310 : vector<8x32xf32>
    %313 = arith.divf %311, %312 : vector<8x32xf32>
    %314 = vector.extract_strided_slice %299 {offsets = [0, 64], sizes = [8, 32], strides = [1, 1]} : vector<8x96xf32> to vector<8x32xf32>
    %315 = arith.addf %314, %35 : vector<8x32xf32>
    %316 = arith.mulf %306, %315 : vector<8x32xf32>
    %317 = arith.addf %29, %316 : vector<8x32xf32>
    %318 = math.tanh %317 : vector<8x32xf32>
    %cst_58 = arith.constant 1.000000e+00 : f32
    %319 = vector.broadcast %cst_58 : f32 to vector<8x32xf32>
    %320 = arith.subf %319, %313 : vector<8x32xf32>
    %321 = arith.mulf %320, %318 : vector<8x32xf32>
    %322 = arith.mulf %313, %0 : vector<8x32xf32>
    %323 = arith.addf %321, %322 : vector<8x32xf32>
    %cst_59 = arith.constant 0.000000e+00 : f32
    %324 = vector.broadcast %cst_59 : f32 to vector<8x32xf32>
    %325 = arith.maximumf %323, %324 : vector<8x32xf32>
    %326 = arith.truncf %323 : vector<8x32xf32> to vector<8x32xbf16>
    %cst_60 = arith.constant dense<0.000000e+00> : vector<8x96xf32>
    %327 = tpu.matmul %326, %37, %cst_60 {dimension_numbers = #tpu.dot_dimension_numbers<[1], [0], [0], [1], [0, 0, 1, 1], [], []>} : vector<8x32xbf16>, vector<32x96xbf16>, vector<8x96xf32> -> vector<8x96xf32>
    %328 = vector.extract_strided_slice %327 {offsets = [0, 0], sizes = [8, 32], strides = [1, 1]} : vector<8x96xf32> to vector<8x32xf32>
    %329 = arith.addf %27, %328 : vector<8x32xf32>
    %330 = arith.negf %329 : vector<8x32xf32>
    %331 = math.exp %330 : vector<8x32xf32>
    %cst_61 = arith.constant 1.000000e+00 : f32
    %332 = vector.broadcast %cst_61 : f32 to vector<8x32xf32>
    %333 = arith.addf %332, %331 : vector<8x32xf32>
    %334 = arith.divf %332, %333 : vector<8x32xf32>
    %335 = vector.extract_strided_slice %327 {offsets = [0, 32], sizes = [8, 32], strides = [1, 1]} : vector<8x96xf32> to vector<8x32xf32>
    %336 = arith.addf %28, %335 : vector<8x32xf32>
    %337 = arith.negf %336 : vector<8x32xf32>
    %338 = math.exp %337 : vector<8x32xf32>
    %cst_62 = arith.constant 1.000000e+00 : f32
    %339 = vector.broadcast %cst_62 : f32 to vector<8x32xf32>
    %340 = arith.addf %339, %338 : vector<8x32xf32>
    %341 = arith.divf %339, %340 : vector<8x32xf32>
    %342 = vector.extract_strided_slice %327 {offsets = [0, 64], sizes = [8, 32], strides = [1, 1]} : vector<8x96xf32> to vector<8x32xf32>
    %343 = arith.addf %342, %35 : vector<8x32xf32>
    %344 = arith.mulf %334, %343 : vector<8x32xf32>
    %345 = arith.addf %29, %344 : vector<8x32xf32>
    %346 = math.tanh %345 : vector<8x32xf32>
    %cst_63 = arith.constant 1.000000e+00 : f32
    %347 = vector.broadcast %cst_63 : f32 to vector<8x32xf32>
    %348 = arith.subf %347, %341 : vector<8x32xf32>
    %349 = arith.mulf %348, %346 : vector<8x32xf32>
    %350 = arith.mulf %341, %323 : vector<8x32xf32>
    %351 = arith.addf %349, %350 : vector<8x32xf32>
    %cst_64 = arith.constant 0.000000e+00 : f32
    %352 = vector.broadcast %cst_64 : f32 to vector<8x32xf32>
    %353 = arith.maximumf %351, %352 : vector<8x32xf32>
    %354 = arith.truncf %351 : vector<8x32xf32> to vector<8x32xbf16>
    %cst_65 = arith.constant dense<0.000000e+00> : vector<8x96xf32>
    %355 = tpu.matmul %354, %37, %cst_65 {dimension_numbers = #tpu.dot_dimension_numbers<[1], [0], [0], [1], [0, 0, 1, 1], [], []>} : vector<8x32xbf16>, vector<32x96xbf16>, vector<8x96xf32> -> vector<8x96xf32>
    %356 = vector.extract_strided_slice %355 {offsets = [0, 0], sizes = [8, 32], strides = [1, 1]} : vector<8x96xf32> to vector<8x32xf32>
    %357 = arith.addf %27, %356 : vector<8x32xf32>
    %358 = arith.negf %357 : vector<8x32xf32>
    %359 = math.exp %358 : vector<8x32xf32>
    %cst_66 = arith.constant 1.000000e+00 : f32
    %360 = vector.broadcast %cst_66 : f32 to vector<8x32xf32>
    %361 = arith.addf %360, %359 : vector<8x32xf32>
    %362 = arith.divf %360, %361 : vector<8x32xf32>
    %363 = vector.extract_strided_slice %355 {offsets = [0, 32], sizes = [8, 32], strides = [1, 1]} : vector<8x96xf32> to vector<8x32xf32>
    %364 = arith.addf %28, %363 : vector<8x32xf32>
    %365 = arith.negf %364 : vector<8x32xf32>
    %366 = math.exp %365 : vector<8x32xf32>
    %cst_67 = arith.constant 1.000000e+00 : f32
    %367 = vector.broadcast %cst_67 : f32 to vector<8x32xf32>
    %368 = arith.addf %367, %366 : vector<8x32xf32>
    %369 = arith.divf %367, %368 : vector<8x32xf32>
    %370 = vector.extract_strided_slice %355 {offsets = [0, 64], sizes = [8, 32], strides = [1, 1]} : vector<8x96xf32> to vector<8x32xf32>
    %371 = arith.addf %370, %35 : vector<8x32xf32>
    %372 = arith.mulf %362, %371 : vector<8x32xf32>
    %373 = arith.addf %29, %372 : vector<8x32xf32>
    %374 = math.tanh %373 : vector<8x32xf32>
    %cst_68 = arith.constant 1.000000e+00 : f32
    %375 = vector.broadcast %cst_68 : f32 to vector<8x32xf32>
    %376 = arith.subf %375, %369 : vector<8x32xf32>
    %377 = arith.mulf %376, %374 : vector<8x32xf32>
    %378 = arith.mulf %369, %351 : vector<8x32xf32>
    %379 = arith.addf %377, %378 : vector<8x32xf32>
    %cst_69 = arith.constant 0.000000e+00 : f32
    %380 = vector.broadcast %cst_69 : f32 to vector<8x32xf32>
    %381 = arith.maximumf %379, %380 : vector<8x32xf32>
    %382 = arith.truncf %379 : vector<8x32xf32> to vector<8x32xbf16>
    %cst_70 = arith.constant dense<0.000000e+00> : vector<8x96xf32>
    %383 = tpu.matmul %382, %37, %cst_70 {dimension_numbers = #tpu.dot_dimension_numbers<[1], [0], [0], [1], [0, 0, 1, 1], [], []>} : vector<8x32xbf16>, vector<32x96xbf16>, vector<8x96xf32> -> vector<8x96xf32>
    %384 = vector.extract_strided_slice %383 {offsets = [0, 0], sizes = [8, 32], strides = [1, 1]} : vector<8x96xf32> to vector<8x32xf32>
    %385 = arith.addf %27, %384 : vector<8x32xf32>
    %386 = arith.negf %385 : vector<8x32xf32>
    %387 = math.exp %386 : vector<8x32xf32>
    %cst_71 = arith.constant 1.000000e+00 : f32
    %388 = vector.broadcast %cst_71 : f32 to vector<8x32xf32>
    %389 = arith.addf %388, %387 : vector<8x32xf32>
    %390 = arith.divf %388, %389 : vector<8x32xf32>
    %391 = vector.extract_strided_slice %383 {offsets = [0, 32], sizes = [8, 32], strides = [1, 1]} : vector<8x96xf32> to vector<8x32xf32>
    %392 = arith.addf %28, %391 : vector<8x32xf32>
    %393 = arith.negf %392 : vector<8x32xf32>
    %394 = math.exp %393 : vector<8x32xf32>
    %cst_72 = arith.constant 1.000000e+00 : f32
    %395 = vector.broadcast %cst_72 : f32 to vector<8x32xf32>
    %396 = arith.addf %395, %394 : vector<8x32xf32>
    %397 = arith.divf %395, %396 : vector<8x32xf32>
    %398 = vector.extract_strided_slice %383 {offsets = [0, 64], sizes = [8, 32], strides = [1, 1]} : vector<8x96xf32> to vector<8x32xf32>
    %399 = arith.addf %398, %35 : vector<8x32xf32>
    %400 = arith.mulf %390, %399 : vector<8x32xf32>
    %401 = arith.addf %29, %400 : vector<8x32xf32>
    %402 = math.tanh %401 : vector<8x32xf32>
    %cst_73 = arith.constant 1.000000e+00 : f32
    %403 = vector.broadcast %cst_73 : f32 to vector<8x32xf32>
    %404 = arith.subf %403, %397 : vector<8x32xf32>
    %405 = arith.mulf %404, %402 : vector<8x32xf32>
    %406 = arith.mulf %397, %379 : vector<8x32xf32>
    %407 = arith.addf %405, %406 : vector<8x32xf32>
    %cst_74 = arith.constant 0.000000e+00 : f32
    %408 = vector.broadcast %cst_74 : f32 to vector<8x32xf32>
    %409 = arith.maximumf %407, %408 : vector<8x32xf32>
    %410 = arith.truncf %407 : vector<8x32xf32> to vector<8x32xbf16>
    %cst_75 = arith.constant dense<0.000000e+00> : vector<8x96xf32>
    %411 = tpu.matmul %410, %37, %cst_75 {dimension_numbers = #tpu.dot_dimension_numbers<[1], [0], [0], [1], [0, 0, 1, 1], [], []>} : vector<8x32xbf16>, vector<32x96xbf16>, vector<8x96xf32> -> vector<8x96xf32>
    %412 = vector.extract_strided_slice %411 {offsets = [0, 0], sizes = [8, 32], strides = [1, 1]} : vector<8x96xf32> to vector<8x32xf32>
    %413 = arith.addf %27, %412 : vector<8x32xf32>
    %414 = arith.negf %413 : vector<8x32xf32>
    %415 = math.exp %414 : vector<8x32xf32>
    %cst_76 = arith.constant 1.000000e+00 : f32
    %416 = vector.broadcast %cst_76 : f32 to vector<8x32xf32>
    %417 = arith.addf %416, %415 : vector<8x32xf32>
    %418 = arith.divf %416, %417 : vector<8x32xf32>
    %419 = vector.extract_strided_slice %411 {offsets = [0, 32], sizes = [8, 32], strides = [1, 1]} : vector<8x96xf32> to vector<8x32xf32>
    %420 = arith.addf %28, %419 : vector<8x32xf32>
    %421 = arith.negf %420 : vector<8x32xf32>
    %422 = math.exp %421 : vector<8x32xf32>
    %cst_77 = arith.constant 1.000000e+00 : f32
    %423 = vector.broadcast %cst_77 : f32 to vector<8x32xf32>
    %424 = arith.addf %423, %422 : vector<8x32xf32>
    %425 = arith.divf %423, %424 : vector<8x32xf32>
    %426 = vector.extract_strided_slice %411 {offsets = [0, 64], sizes = [8, 32], strides = [1, 1]} : vector<8x96xf32> to vector<8x32xf32>
    %427 = arith.addf %426, %35 : vector<8x32xf32>
    %428 = arith.mulf %418, %427 : vector<8x32xf32>
    %429 = arith.addf %29, %428 : vector<8x32xf32>
    %430 = math.tanh %429 : vector<8x32xf32>
    %cst_78 = arith.constant 1.000000e+00 : f32
    %431 = vector.broadcast %cst_78 : f32 to vector<8x32xf32>
    %432 = arith.subf %431, %425 : vector<8x32xf32>
    %433 = arith.mulf %432, %430 : vector<8x32xf32>
    %434 = arith.mulf %425, %407 : vector<8x32xf32>
    %435 = arith.addf %433, %434 : vector<8x32xf32>
    %cst_79 = arith.constant 0.000000e+00 : f32
    %436 = vector.broadcast %cst_79 : f32 to vector<8x32xf32>
    %437 = arith.maximumf %435, %436 : vector<8x32xf32>
    %438 = tpu.concatenate %63, %89, %115, %141, %167, %193, %219, %245, %271, %297 in 0 : vector<8x32xf32>, vector<8x32xf32>, vector<8x32xf32>, vector<8x32xf32>, vector<8x32xf32>, vector<8x32xf32>, vector<8x32xf32>, vector<8x32xf32>, vector<8x32xf32>, vector<8x32xf32> -> vector<80x32xf32>
    %439 = arith.truncf %438 : vector<80x32xf32> to vector<80x32xbf16>
    %c0_80 = arith.constant 0 : index
    %c0_81 = arith.constant 0 : index
    %440 = vector.load %arg5[%c0_80, %c0_81] : memref<32x4xbf16, #tpu.memory_space<vmem>>, vector<32x4xbf16>
    %cst_82 = arith.constant dense<0.000000e+00> : vector<80x4xf32>
    %441 = tpu.matmul %439, %440, %cst_82 {dimension_numbers = #tpu.dot_dimension_numbers<[1], [0], [0], [1], [0, 0, 1, 1], [], []>} : vector<80x32xbf16>, vector<32x4xbf16>, vector<80x4xf32> -> vector<80x4xf32>
    %442 = vector.broadcast %3 : vector<1x4xf32> to vector<80x4xf32>
    %443 = arith.addf %441, %442 : vector<80x4xf32>
    %c0_83 = arith.constant 0 : index
    %c0_84 = arith.constant 0 : index
    %444 = vector.load %arg9[%c0_83, %c0_84] : memref<80x4xf32, #tpu.memory_space<vmem>>, vector<80x4xf32>
    tpu.vector_store %arg9[%c0_83, %c0_84], %443 {strides = array<i32>} : memref<80x4xf32, #tpu.memory_space<vmem>>, vector<80x4xf32>,
    %445 = tpu.concatenate %325, %353, %381, %409, %437 in 0 : vector<8x32xf32>, vector<8x32xf32>, vector<8x32xf32>, vector<8x32xf32>, vector<8x32xf32> -> vector<40x32xf32>
    %446 = arith.truncf %445 : vector<40x32xf32> to vector<40x32xbf16>
    %c0_85 = arith.constant 0 : index
    %c0_86 = arith.constant 0 : index
    %447 = vector.load %arg6[%c0_85, %c0_86] : memref<32x6xbf16, #tpu.memory_space<vmem>>, vector<32x6xbf16>
    %cst_87 = arith.constant dense<0.000000e+00> : vector<40x6xf32>
    %448 = tpu.matmul %446, %447, %cst_87 {dimension_numbers = #tpu.dot_dimension_numbers<[1], [0], [0], [1], [0, 0, 1, 1], [], []>} : vector<40x32xbf16>, vector<32x6xbf16>, vector<40x6xf32> -> vector<40x6xf32>
    %449 = vector.broadcast %4 : vector<1x6xf32> to vector<40x6xf32>
    %450 = arith.addf %448, %449 : vector<40x6xf32>
    %c0_88 = arith.constant 0 : index
    %c0_89 = arith.constant 0 : index
    %451 = vector.load %arg10[%c0_88, %c0_89] : memref<40x6xf32, #tpu.memory_space<vmem>>, vector<40x6xf32>
    tpu.vector_store %arg10[%c0_88, %c0_89], %450 {strides = array<i32>} : memref<40x6xf32, #tpu.memory_space<vmem>>, vector<40x6xf32>,
    return
  }
}

</mosaic_0001>

<bundles_post_ra>
// kernel: decoder_rnn_forward.1
= control target key start
LH: loop header
LB: loop body
LE: loop exit
PB: predicated region body
PF: predicated region fallthrough
CT: control target
= control target key end

     0   :  { %v2060_v1 = vmov 0.0   ;;  %vm2061_vm0 = vmmov 0   ;;  %vm62_vm1 = vcmask 261120   ;;  %s2615_s0 = inlined_call_operand.vmem [shape: f32[8,32], index: 0, kind: input, shape index: {}]   ;;  %s2616_s1 = inlined_call_operand.vmem [shape: bf16[32,16], index: 1, kind: input, shape index: {}]   ;;  %s2617_s2 = inlined_call_operand.vmem [shape: bf16[16,192], index: 2, kind: input, shape index: {}]   ;;  %s2618_s3 = inlined_call_operand.vmem [shape: bf16[32,96], index: 3, kind: input, shape index: {}]   ;;  %s2619_s4 = inlined_call_operand.vmem [shape: bf16[32,96], index: 4, kind: input, shape index: {}]   ;;  %s2620_s5 = inlined_call_operand.vmem [shape: bf16[32,4], index: 5, kind: input, shape index: {}]   ;;  %s2621_s6 = inlined_call_operand.vmem [shape: bf16[32,6], index: 6, kind: input, shape index: {}]   ;;  %s2622_s7 = inlined_call_operand.vmem [shape: f32[2,128], index: 7, kind: input, shape index: {}]   ;;  %s2623_s8 = inlined_call_operand.vmem [shape: f32[1,26], index: 8, kind: input, shape index: {}]   ;;  %s2624_s9 = inlined_call_operand.vmem [shape: f32[80,4], index: 9, kind: output, shape index: {0}]   ;;  %s2625_s10 = inlined_call_operand.hbm [shape: f32[40,6], index: 10, kind: output, shape index: {1}]  }
   0x1   :  { %v1912_v0 = vld [vmem:[%s2616_s1] sm:$0xff]   ;;  %1733 = vmatprep.subr.bf16.mxu0 %v2060_v1  ;;  %v1913_v2 = vld [vmem:[%s2616_s1 + $0x8] sm:$0xff]   ;;  %1737 = vmatprep.mubr.msk.bf16.mxu0 %vm2061_vm0, %v2060_v1 }
   0x2   :  { %1734 = vmatpush3.bf16.msra.mxu0 %v1912_v0  ;;  %v2138_v3 = vld [vmem:[%s2615_s0] sm:$0xff] }
   0x3   :  { %1735 = vmatprep.subr.bf16.mxu0 %v2060_v1  ;;  %v2143_v4 = vpack.c.bf16 %v2138_v3, %v2138_v3 }
   0x6   :  { %1736 = vmatpush3.bf16.msra.mxu0 %v1913_v2 }
   0x7   :  { %1765 = vmatprep.subr.bf16.mxu0 %v2060_v1 }
   0x8   :  { %16 = vsyncpa [#allocation3], 0  ;;  %v1914_v5 = vld [vmem:[%s2617_s2 + $0x4] ss:$8 sps:$4 sm:$0xff]   ;;  %v1916_v6 = vld [vmem:[%s2617_s2] ss:$8 sps:$4 sm:$0xff]   ;;  %v165_v10 = vlaneseq }
   0x9   :  { %1738 = vmatmul.mubr.msk.bf16.vlgmr.msra.gmra.mrb[0].mxu0 %vm62_vm1, %v2143_v4  ;;  %124 = vmatprep.subr.bf16.mxu1 %v1914_v5  ;;  %v2062_v7 = vmov 0   ;;  %v2160_v8 = vld [vmem:[%s2618_s3] sm:$0xff]   ;;  %v2167_v9 = vld [vmem:[%s2618_s3 + $0x8] sm:$0xff]   ;;  %s2063_s26 = smov 96   ;;  %vm120_vm2 = vcmask 130048   ;;  %s2065_s28 = smov 32  }
   0xa   :  { %1769 = vmatprep.mubr.msk.bf16.mxu0 %vm2061_vm0, %v2060_v1  ;;  %125 = vmatpush1.bf16.msra.mxu1 %v1916_v6  ;;  %v166_v11 = vshrl.u32 %v165_v10, 7  ;;  %v38_v12 = vld [vmem:[%s2622_s7] sm:$0x3]  ;;  %s2064_s7 = smov 64   ;;  %s2066_s0 = smov 112   ;;  %vm1589_vm3 = vcmask 48128  }
   0xb   :  { %1741 = vmatprep.subr.bf16.mxu1 %v2060_v1  ;;  %156 = vmatprep.mubr.bf16.mxu1 %v2062_v7  ;;  %v1615_v17 = vld [vmem:[%s2623_s8] ss:$0 sm:$0xff]  ;;  %vm1491_vm4 = vcmask 31744   ;;  %s2068_s15 = smov [#allocation2]  }
   0xc   :  { %1766 = vmatpush3.bf16.msra.mxu0 %v2160_v8  ;;  %v167_v13 = vsub.s32 0, %v166_v11  ;;  %v172_v14 = vsub.s32 1, %v166_v11 }
   0xd   :  { %1767 = vmatprep.subr.bf16.mxu0 %v2060_v1 }
   0xe   :  { %v168_v15 = vrot.slane %v38_v12, %v167_v13  ;;  %v2174_v16 = vrot.slane %v38_v12, %v172_v14 }
  0x10   :  { %1768 = vmatpush3.bf16.msra.mxu0 %v2167_v9  ;;  %248 = vrot.lane.b32.xlu0 %v168_v15, %s2063_s26 }
  0x11   :  { %1781 = vmatprep.subr.bf16.mxu0 %v2060_v1 }
  0x82   :  { %v2198_v29 = vpop.permute.xlu0 %248 }
  0xdc   :  { %v100_v18 = vpop.f32.mrb[0].mxu0 }
  0xdd   :  { %v101_v19 = vadd.f32 %v1615_v17, %v100_v18  ;;  %v1739_v20 = vpop.f32.mrb[1].mxu0 }
  0xde   :  { %v103_v21 = vpop.f32.mrb[2].mxu0 }
  0xdf   :  { %v106_v22 = vmax.f32 %v101_v19, 0.0  ;;  %v1740_v23 = vpop.f32.mrb[3].mxu0 }
  0xe1   :  { %v107_v24 = vpack.c.bf16 %v106_v22, %v106_v22 }
  0xe3   :  { %1621 = vmatmul.mubr.msk.bf16.vlgmr.msra.gmra.mrb[0].mxu1 %vm120_vm2, %v107_v24 }
  0xe4   :  { %1742 = vmatpush3.bf16.msra.mxu1 %v2160_v8  ;;  %1745 = vmatprep.mubr.msk.bf16.mxu1 %vm2061_vm0, %v2060_v1 }
  0xe5   :  { %1743 = vmatprep.subr.bf16.mxu1 %v2060_v1 }
  0xe8   :  { %1744 = vmatpush3.bf16.msra.mxu1 %v2167_v9 }
  0xe9   :  { %1749 = vmatprep.subr.bf16.mxu1 %v2060_v1 }
  0xeb   :  { %1746 = vmatmul.mubr.msk.bf16.vlgmr.msra.gmra.mrb[4].mxu1 %vm62_vm1, %v2143_v4 }
  0xec   :  { %1750 = vmatpush3.bf16.msra.mxu1 %v2160_v8  ;;  %1753 = vmatprep.mubr.msk.bf16.mxu1 %vm2061_vm0, %v2060_v1 }
  0xed   :  { %1751 = vmatprep.subr.bf16.mxu1 %v2060_v1 }
  0xf0   :  { %1752 = vmatpush3.bf16.msra.mxu1 %v2167_v9 }
  0xf1   :  { %1757 = vmatprep.subr.bf16.mxu1 %v2060_v1 }
 0x1b6   :  { %v2194_v25 = vpop.f32.mrb[0].mxu1 }
 0x1b7   :  { %v2196_v26 = vpop.f32.mrb[1].mxu1  ;;  %v2205_v35 = vadd.f32 %v168_v15, %v2194_v25 }
 0x1b8   :  { %v162_v27 = vpop.f32.mrb[2].mxu1 }
 0x1b9   :  { %v163_v28 = vpop.f32.mrb[3].mxu1 }
 0x1be   :  { %v234_v30 = vpop.f32.mrb[4].mxu1 }
 0x1bf   :  { %v251_v31 = vadd.f32 %v2198_v29, %v234_v30  ;;  %v1747_v32 = vpop.f32.mrb[5].mxu1  ;;  %v240_v36 = vadd.f32 %v234_v30, %v2205_v35 }
 0x1c0   :  { %v237_v33 = vpop.f32.mrb[6].mxu1 }
 0x1c1   :  { %253 = vrot.lane.b32.xlu0 %v251_v31, %s2064_s7  ;;  %v1748_v34 = vpop.f32.mrb[7].mxu1  ;;  %v1625_v37 = vmul.f32 -1.442695, %v240_v36 }
 0x1c3   :  { %1925 = vpow2.f32 %v1625_v37 }
 0x1c5   :  { %270 = vrot.lane.b32.xlu0 %v2138_v3, %s2065_s28 }
 0x1cd   :  { %v1926_v38 = vpop.eup %1925 }
 0x1ce   :  { %v244_v39 = vadd.f32 1.0, %v1926_v38 }
 0x1d0   :  { %1927 = vrcp.f32 %v244_v39 }
 0x1da   :  { %v1928_v40 = vpop.eup %1927 }
 0x1db   :  { %v263_v47 = vsub.f32 1.0, %v1928_v40 }
 0x233   :  { %v254_v41 = vpop.permute.xlu0 %253 }
 0x234   :  { %v256_v42 = vmul.f32 %v1928_v40, %v254_v41 }
 0x236   :  { %258 = vrot.lane.b32.xlu1 %v256_v42, %s2064_s7 }
 0x237   :  { %v271_v46 = vpop.permute.xlu0 %270 }
 0x238   :  { %v273_v49 = vmul.f32 %v1928_v40, %v271_v46 }
 0x2a8   :  { %v259_v43 = vpop.permute.xlu1 %258 }
 0x2a9   :  { %v261_v44 = vadd.f32 %v259_v43, %v2205_v35 }
 0x2ab   :  { %1929 = vtanh.f32 %v261_v44 }
 0x2b5   :  { %v1930_v45 = vpop.eup %1929 }
 0x2b6   :  { %265 = vrot.lane.b32.xlu1 %v1930_v45, %s2063_s26 }
 0x328   :  { %v266_v48 = vpop.permute.xlu1 %265 }
 0x329   :  { %v268_v50 = vmul.f32 %v266_v48, %v263_v47 }
 0x32b   :  { %v2211_v51 = vadd.f32 %v273_v49, %v268_v50 }
 0x32d   :  { %v275_v52 = vpack.c.bf16 %v2211_v51, %v2211_v51 }
 0x32f   :  { %277 = vrot.lane.b32.xlu1 %v275_v52, %s2063_s26 }
 0x3a1   :  { %v278_v53 = vpop.permute.xlu1 %277 }
 0x3a2   :  { %1754 = vmatmul.mubr.msk.bf16.vlgmr.msra.gmra.mrb[8].mxu1 %vm62_vm1, %v278_v53 }
 0x3a3   :  { %1758 = vmatpush3.bf16.msra.mxu1 %v2160_v8  ;;  %1761 = vmatprep.mubr.msk.bf16.mxu1 %vm2061_vm0, %v2060_v1 }
 0x3a4   :  { %1759 = vmatprep.subr.bf16.mxu1 %v2060_v1 }
 0x3a7   :  { %1760 = vmatpush3.bf16.msra.mxu1 %v2167_v9 }
 0x3a8   :  { %1773 = vmatprep.subr.bf16.mxu1 %v2060_v1 }
 0x475   :  { %v316_v54 = vpop.f32.mrb[8].mxu1 }
 0x476   :  { %v329_v55 = vadd.f32 %v316_v54, %v2198_v29  ;;  %v1755_v56 = vpop.f32.mrb[9].mxu1  ;;  %v322_v59 = vadd.f32 %v316_v54, %v2205_v35 }
 0x477   :  { %v319_v57 = vpop.f32.mrb[10].mxu1 }
 0x478   :  { %331 = vrot.lane.b32.xlu0 %v329_v55, %s2064_s7  ;;  %v1756_v58 = vpop.f32.mrb[11].mxu1  ;;  %v1627_v60 = vmul.f32 -1.442695, %v322_v59 }
 0x47a   :  { %1931 = vpow2.f32 %v1627_v60 }
 0x484   :  { %v1932_v61 = vpop.eup %1931 }
 0x485   :  { %v326_v62 = vadd.f32 1.0, %v1932_v61 }
 0x487   :  { %1933 = vrcp.f32 %v326_v62 }
 0x491   :  { %v1934_v63 = vpop.eup %1933 }
 0x492   :  { %v341_v10 = vsub.f32 1.0, %v1934_v63  ;;  %v347_v12 = vmul.f32 %v1934_v63, %v2211_v51 }
 0x4ea   :  { %v332_v0 = vpop.permute.xlu0 %331 }
 0x4eb   :  { %v334_v2 = vmul.f32 %v1934_v63, %v332_v0 }
 0x4ed   :  { %336 = vrot.lane.b32.xlu1 %v334_v2, %s2064_s7 }
 0x55f   :  { %v337_v5 = vpop.permute.xlu1 %336 }
 0x560   :  { %v339_v6 = vadd.f32 %v337_v5, %v2205_v35 }
 0x562   :  { %1935 = vtanh.f32 %v339_v6 }
 0x56c   :  { %v1936_v7 = vpop.eup %1935 }
 0x56d   :  { %343 = vrot.lane.b32.xlu0 %v1936_v7, %s2063_s26 }
 0x5df   :  { %v344_v11 = vpop.permute.xlu0 %343 }
 0x5e0   :  { %v346_v13 = vmul.f32 %v344_v11, %v341_v10 }
 0x5e2   :  { %v2230_v14 = vadd.f32 %v347_v12, %v346_v13 }
 0x5e4   :  { %v349_v15 = vpack.c.bf16 %v2230_v14, %v2230_v14 }
 0x5e6   :  { %351 = vrot.lane.b32.xlu1 %v349_v15, %s2063_s26 }
 0x658   :  { %v352_v17 = vpop.permute.xlu1 %351 }
 0x659   :  { %1762 = vmatmul.mubr.msk.bf16.vlgmr.msra.gmra.mrb[12].mxu1 %vm62_vm1, %v352_v17 }
 0x65a   :  { %1774 = vmatpush3.bf16.msra.mxu1 %v2160_v8  ;;  %1777 = vmatprep.mubr.msk.bf16.mxu1 %vm2061_vm0, %v2060_v1 }
 0x65b   :  { %1775 = vmatprep.subr.bf16.mxu1 %v2060_v1 }
 0x65e   :  { %1776 = vmatpush3.bf16.msra.mxu1 %v2167_v9 }
 0x65f   :  { %1789 = vmatprep.subr.bf16.mxu1 %v2060_v1 }
 0x72c   :  { %v390_v18 = vpop.f32.mrb[12].mxu1 }
 0x72d   :  { %v403_v19 = vadd.f32 %v390_v18, %v2198_v29  ;;  %v1763_v20 = vpop.f32.mrb[13].mxu1  ;;  %v396_v23 = vadd.f32 %v390_v18, %v2205_v35 }
 0x72e   :  { %v393_v21 = vpop.f32.mrb[14].mxu1 }
 0x72f   :  { %405 = vrot.lane.b32.xlu0 %v403_v19, %s2064_s7  ;;  %v1764_v22 = vpop.f32.mrb[15].mxu1  ;;  %v1629_v24 = vmul.f32 -1.442695, %v396_v23 }
 0x731   :  { %1937 = vpow2.f32 %v1629_v24 }
 0x73b   :  { %v1938_v27 = vpop.eup %1937 }
 0x73c   :  { %v400_v28 = vadd.f32 1.0, %v1938_v27 }
 0x73e   :  { %1939 = vrcp.f32 %v400_v28 }
 0x748   :  { %v1940_v30 = vpop.eup %1939 }
 0x749   :  { %v415_v37 = vsub.f32 1.0, %v1940_v30  ;;  %v421_v39 = vmul.f32 %v1940_v30, %v2230_v14 }
 0x7a1   :  { %v406_v31 = vpop.permute.xlu0 %405 }
 0x7a2   :  { %v408_v32 = vmul.f32 %v1940_v30, %v406_v31 }
 0x7a4   :  { %410 = vrot.lane.b32.xlu1 %v408_v32, %s2064_s7 }
 0x816   :  { %v411_v33 = vpop.permute.xlu1 %410 }
 0x817   :  { %v413_v34 = vadd.f32 %v411_v33, %v2205_v35 }
 0x819   :  { %1941 = vtanh.f32 %v413_v34 }
 0x823   :  { %v1942_v36 = vpop.eup %1941 }
 0x824   :  { %417 = vrot.lane.b32.xlu0 %v1942_v36, %s2063_s26 }
 0x896   :  { %v418_v38 = vpop.permute.xlu0 %417 }
 0x897   :  { %v420_v40 = vmul.f32 %v418_v38, %v415_v37 }
 0x899   :  { %v2249_v41 = vadd.f32 %v421_v39, %v420_v40 }
 0x89b   :  { %v423_v42 = vpack.c.bf16 %v2249_v41, %v2249_v41 }
 0x89d   :  { %425 = vrot.lane.b32.xlu1 %v423_v42, %s2063_s26 }
 0x90f   :  { %v426_v43 = vpop.permute.xlu1 %425 }
 0x910   :  { %1770 = vmatmul.mubr.msk.bf16.vlgmr.msra.gmra.mrb[4].mxu0 %vm62_vm1, %v426_v43 }
 0x911   :  { %1782 = vmatpush3.bf16.msra.mxu0 %v2160_v8  ;;  %1785 = vmatprep.mubr.msk.bf16.mxu0 %vm2061_vm0, %v2060_v1 }
 0x912   :  { %1783 = vmatprep.subr.bf16.mxu0 %v2060_v1 }
 0x915   :  { %1784 = vmatpush3.bf16.msra.mxu0 %v2167_v9 }
 0x916   :  { %1797 = vmatprep.subr.bf16.mxu0 %v2060_v1 }
 0x9e3   :  { %v464_v44 = vpop.f32.mrb[4].mxu0 }
 0x9e4   :  { %v477_v45 = vadd.f32 %v464_v44, %v2198_v29  ;;  %v1771_v46 = vpop.f32.mrb[5].mxu0  ;;  %v470_v49 = vadd.f32 %v464_v44, %v2205_v35 }
 0x9e5   :  { %v467_v47 = vpop.f32.mrb[6].mxu0 }
 0x9e6   :  { %479 = vrot.lane.b32.xlu0 %v477_v45, %s2064_s7  ;;  %v1772_v48 = vpop.f32.mrb[7].mxu0  ;;  %v1631_v50 = vmul.f32 -1.442695, %v470_v49 }
 0x9e8   :  { %1943 = vpow2.f32 %v1631_v50 }
 0x9f2   :  { %v1944_v52 = vpop.eup %1943 }
 0x9f3   :  { %v474_v53 = vadd.f32 1.0, %v1944_v52 }
 0x9f5   :  { %1945 = vrcp.f32 %v474_v53 }
 0x9ff   :  { %v1946_v54 = vpop.eup %1945 }
 0xa00   :  { %v489_v60 = vsub.f32 1.0, %v1946_v54  ;;  %v495_v62 = vmul.f32 %v1946_v54, %v2249_v41 }
 0xa58   :  { %v480_v55 = vpop.permute.xlu0 %479 }
 0xa59   :  { %v482_v56 = vmul.f32 %v1946_v54, %v480_v55 }
 0xa5b   :  { %484 = vrot.lane.b32.xlu1 %v482_v56, %s2064_s7 }
 0xacd   :  { %v485_v57 = vpop.permute.xlu1 %484 }
 0xace   :  { %v487_v58 = vadd.f32 %v485_v57, %v2205_v35 }
 0xad0   :  { %1947 = vtanh.f32 %v487_v58 }
 0xada   :  { %v1948_v59 = vpop.eup %1947 }
 0xadb   :  { %491 = vrot.lane.b32.xlu0 %v1948_v59, %s2063_s26 }
 0xb4d   :  { %v492_v61 = vpop.permute.xlu0 %491 }
 0xb4e   :  { %v494_v63 = vmul.f32 %v492_v61, %v489_v60 }
 0xb50   :  { %v2268_v0 = vadd.f32 %v495_v62, %v494_v63 }
 0xb52   :  { %v497_v2 = vpack.c.bf16 %v2268_v0, %v2268_v0 }
 0xb54   :  { %499 = vrot.lane.b32.xlu1 %v497_v2, %s2063_s26 }
 0xbc6   :  { %v500_v5 = vpop.permute.xlu1 %499 }
 0xbc7   :  { %1778 = vmatmul.mubr.msk.bf16.vlgmr.msra.gmra.mrb[16].mxu1 %vm62_vm1, %v500_v5 }
 0xbc8   :  { %1790 = vmatpush3.bf16.msra.mxu1 %v2160_v8  ;;  %1793 = vmatprep.mubr.msk.bf16.mxu1 %vm2061_vm0, %v2060_v1 }
 0xbc9   :  { %1791 = vmatprep.subr.bf16.mxu1 %v2060_v1 }
 0xbcc   :  { %1792 = vmatpush3.bf16.msra.mxu1 %v2167_v9 }
 0xbcd   :  { %1805 = vmatprep.subr.bf16.mxu1 %v2060_v1 }
 0xc9a   :  { %v538_v6 = vpop.f32.mrb[16].mxu1 }
 0xc9b   :  { %v551_v7 = vadd.f32 %v538_v6, %v2198_v29  ;;  %v1779_v10 = vpop.f32.mrb[17].mxu1  ;;  %v544_v13 = vadd.f32 %v538_v6, %v2205_v35 }
 0xc9c   :  { %v541_v11 = vpop.f32.mrb[18].mxu1 }
 0xc9d   :  { %553 = vrot.lane.b32.xlu0 %v551_v7, %s2064_s7  ;;  %v1780_v12 = vpop.f32.mrb[19].mxu1  ;;  %v1633_v15 = vmul.f32 -1.442695, %v544_v13 }
 0xc9f   :  { %1949 = vpow2.f32 %v1633_v15 }
 0xca9   :  { %v1950_v17 = vpop.eup %1949 }
 0xcaa   :  { %v548_v18 = vadd.f32 1.0, %v1950_v17 }
 0xcac   :  { %1951 = vrcp.f32 %v548_v18 }
 0xcb6   :  { %v1952_v19 = vpop.eup %1951 }
 0xcb7   :  { %v563_v27 = vsub.f32 1.0, %v1952_v19  ;;  %v569_v30 = vmul.f32 %v1952_v19, %v2268_v0 }
 0xd0f   :  { %v554_v20 = vpop.permute.xlu0 %553 }
 0xd10   :  { %v556_v21 = vmul.f32 %v1952_v19, %v554_v20 }
 0xd12   :  { %558 = vrot.lane.b32.xlu1 %v556_v21, %s2064_s7 }
 0xd84   :  { %v559_v22 = vpop.permute.xlu1 %558 }
 0xd85   :  { %v561_v23 = vadd.f32 %v559_v22, %v2205_v35 }
 0xd87   :  { %1953 = vtanh.f32 %v561_v23 }
 0xd91   :  { %v1954_v24 = vpop.eup %1953 }
 0xd92   :  { %565 = vrot.lane.b32.xlu0 %v1954_v24, %s2063_s26 }
 0xe04   :  { %v566_v28 = vpop.permute.xlu0 %565 }
 0xe05   :  { %v568_v31 = vmul.f32 %v566_v28, %v563_v27 }
 0xe07   :  { %v2287_v32 = vadd.f32 %v569_v30, %v568_v31 }
 0xe09   :  { %v571_v33 = vpack.c.bf16 %v2287_v32, %v2287_v32 }
 0xe0b   :  { %573 = vrot.lane.b32.xlu1 %v571_v33, %s2063_s26 }
 0xe7d   :  { %v574_v34 = vpop.permute.xlu1 %573 }
 0xe7e   :  { %1786 = vmatmul.mubr.msk.bf16.vlgmr.msra.gmra.mrb[8].mxu0 %vm62_vm1, %v574_v34 }
 0xe7f   :  { %1798 = vmatpush3.bf16.msra.mxu0 %v2160_v8  ;;  %1801 = vmatprep.mubr.msk.bf16.mxu0 %vm2061_vm0, %v2060_v1 }
 0xe80   :  { %1799 = vmatprep.subr.bf16.mxu0 %v2060_v1 }
 0xe83   :  { %1800 = vmatpush3.bf16.msra.mxu0 %v2167_v9 }
 0xe84   :  { %1813 = vmatprep.subr.bf16.mxu0 %v2060_v1 }
 0xf51   :  { %v612_v36 = vpop.f32.mrb[8].mxu0 }
 0xf52   :  { %v625_v37 = vadd.f32 %v612_v36, %v2198_v29  ;;  %v1787_v38 = vpop.f32.mrb[9].mxu0  ;;  %v618_v42 = vadd.f32 %v612_v36, %v2205_v35 }
 0xf53   :  { %v615_v39 = vpop.f32.mrb[10].mxu0 }
 0xf54   :  { %627 = vrot.lane.b32.xlu0 %v625_v37, %s2064_s7  ;;  %v1788_v40 = vpop.f32.mrb[11].mxu0  ;;  %v1635_v43 = vmul.f32 -1.442695, %v618_v42 }
 0xf56   :  { %1955 = vpow2.f32 %v1635_v43 }
 0xf60   :  { %v1956_v44 = vpop.eup %1955 }
 0xf61   :  { %v622_v45 = vadd.f32 1.0, %v1956_v44 }
 0xf63   :  { %1957 = vrcp.f32 %v622_v45 }
 0xf6d   :  { %v1958_v46 = vpop.eup %1957 }
 0xf6e   :  { %v637_v53 = vsub.f32 1.0, %v1958_v46  ;;  %v643_v55 = vmul.f32 %v1958_v46, %v2287_v32 }
 0xfc6   :  { %v628_v47 = vpop.permute.xlu0 %627 }
 0xfc7   :  { %v630_v48 = vmul.f32 %v1958_v46, %v628_v47 }
 0xfc9   :  { %632 = vrot.lane.b32.xlu1 %v630_v48, %s2064_s7 }
0x103b   :  { %v633_v49 = vpop.permute.xlu1 %632 }
0x103c   :  { %v635_v50 = vadd.f32 %v633_v49, %v2205_v35 }
0x103e   :  { %1959 = vtanh.f32 %v635_v50 }
0x1048   :  { %v1960_v52 = vpop.eup %1959 }
0x1049   :  { %639 = vrot.lane.b32.xlu0 %v1960_v52, %s2063_s26  ;;  %v2354_v52 = vld [vmem:[%s2619_s4] sm:$0xff]  }
0x10bb   :  { %v640_v54 = vpop.permute.xlu0 %639 }
0x10bc   :  { %v642_v56 = vmul.f32 %v640_v54, %v637_v53  ;;  %v2361_v54 = vld [vmem:[%s2619_s4 + $0x8] sm:$0xff]  }
0x10be   :  { %v2306_v57 = vadd.f32 %v643_v55, %v642_v56 }
0x10c0   :  { %v645_v58 = vpack.c.bf16 %v2306_v57, %v2306_v57 }
0x10c2   :  { %647 = vrot.lane.b32.xlu1 %v645_v58, %s2063_s26 }
0x1134   :  { %v648_v59 = vpop.permute.xlu1 %647 }
0x1135   :  { %1794 = vmatmul.mubr.msk.bf16.vlgmr.msra.gmra.mrb[20].mxu1 %vm62_vm1, %v648_v59 }
0x1136   :  { %1806 = vmatpush3.bf16.msra.mxu1 %v2160_v8  ;;  %1809 = vmatprep.mubr.msk.bf16.mxu1 %vm2061_vm0, %v2060_v1 }
0x1137   :  { %1807 = vmatprep.subr.bf16.mxu1 %v2060_v1 }
0x113a   :  { %1808 = vmatpush3.bf16.msra.mxu1 %v2167_v9 }
0x113b   :  { %1821 = vmatprep.subr.bf16.mxu1 %v2060_v1 }
0x1208   :  { %v686_v60 = vpop.f32.mrb[20].mxu1 }
0x1209   :  { %v699_v61 = vadd.f32 %v686_v60, %v2198_v29  ;;  %v1795_v62 = vpop.f32.mrb[21].mxu1  ;;  %v692_v5 = vadd.f32 %v686_v60, %v2205_v35 }
0x120a   :  { %v689_v63 = vpop.f32.mrb[22].mxu1 }
0x120b   :  { %701 = vrot.lane.b32.xlu0 %v699_v61, %s2064_s7  ;;  %v1796_v2 = vpop.f32.mrb[23].mxu1  ;;  %v1637_v6 = vmul.f32 -1.442695, %v692_v5 }
0x120d   :  { %1961 = vpow2.f32 %v1637_v6 }
0x1217   :  { %v1962_v7 = vpop.eup %1961 }
0x1218   :  { %v696_v10 = vadd.f32 1.0, %v1962_v7 }
0x121a   :  { %1963 = vrcp.f32 %v696_v10 }
0x1224   :  { %v1964_v11 = vpop.eup %1963 }
0x1225   :  { %v711_v19 = vsub.f32 1.0, %v1964_v11  ;;  %v717_v21 = vmul.f32 %v1964_v11, %v2306_v57 }
0x127d   :  { %v702_v12 = vpop.permute.xlu0 %701 }
0x127e   :  { %v704_v13 = vmul.f32 %v1964_v11, %v702_v12 }
0x1280   :  { %706 = vrot.lane.b32.xlu1 %v704_v13, %s2064_s7 }
0x12f2   :  { %v707_v15 = vpop.permute.xlu1 %706 }
0x12f3   :  { %v709_v17 = vadd.f32 %v707_v15, %v2205_v35 }
0x12f5   :  { %1965 = vtanh.f32 %v709_v17 }
0x12ff   :  { %v1966_v18 = vpop.eup %1965 }
0x1300   :  { %713 = vrot.lane.b32.xlu0 %v1966_v18, %s2063_s26 }
0x1372   :  { %v714_v20 = vpop.permute.xlu0 %713 }
0x1373   :  { %v716_v22 = vmul.f32 %v714_v20, %v711_v19 }
0x1375   :  { %v2325_v23 = vadd.f32 %v717_v21, %v716_v22 }
0x1377   :  { %v719_v24 = vpack.c.bf16 %v2325_v23, %v2325_v23 }
0x1379   :  { %721 = vrot.lane.b32.xlu1 %v719_v24, %s2063_s26 }
0x13eb   :  { %v722_v27 = vpop.permute.xlu1 %721 }
0x13ec   :  { %1802 = vmatmul.mubr.msk.bf16.vlgmr.msra.gmra.mrb[12].mxu0 %vm62_vm1, %v722_v27 }
0x13ed   :  { %1814 = vmatpush3.bf16.msra.mxu0 %v2160_v8  ;;  %1817 = vmatprep.mubr.msk.bf16.mxu0 %vm2061_vm0, %v2060_v1 }
0x13ee   :  { %1815 = vmatprep.subr.bf16.mxu0 %v2060_v1 }
0x13f1   :  { %1816 = vmatpush3.bf16.msra.mxu0 %v2167_v9 }
0x13f2   :  { %1829 = vmatprep.subr.bf16.mxu0 %v2060_v1 }
0x14bf   :  { %v760_v28 = vpop.f32.mrb[12].mxu0 }
0x14c0   :  { %v773_v30 = vadd.f32 %v760_v28, %v2198_v29  ;;  %v1803_v31 = vpop.f32.mrb[13].mxu0  ;;  %v766_v36 = vadd.f32 %v760_v28, %v2205_v35 }
0x14c1   :  { %v763_v33 = vpop.f32.mrb[14].mxu0 }
0x14c2   :  { %775 = vrot.lane.b32.xlu0 %v773_v30, %s2064_s7  ;;  %v1804_v34 = vpop.f32.mrb[15].mxu0  ;;  %v1639_v8 = vmul.f32 -1.442695, %v766_v36 }
0x14c4   :  { %1967 = vpow2.f32 %v1639_v8 }
0x14ce   :  { %v1968_v37 = vpop.eup %1967 }
0x14cf   :  { %v770_v38 = vadd.f32 1.0, %v1968_v37 }
0x14d1   :  { %1969 = vrcp.f32 %v770_v38 }
0x14db   :  { %v1970_v39 = vpop.eup %1969 }
0x14dc   :  { %v785_v45 = vsub.f32 1.0, %v1970_v39  ;;  %v791_v47 = vmul.f32 %v1970_v39, %v2325_v23 }
0x1534   :  { %v776_v40 = vpop.permute.xlu0 %775 }
0x1535   :  { %v778_v9 = vmul.f32 %v1970_v39, %v776_v40 }
0x1537   :  { %780 = vrot.lane.b32.xlu1 %v778_v9, %s2064_s7 }
0x15a9   :  { %v781_v42 = vpop.permute.xlu1 %780 }
0x15aa   :  { %v783_v43 = vadd.f32 %v781_v42, %v2205_v35 }
0x15ac   :  { %1971 = vtanh.f32 %v783_v43 }
0x15b6   :  { %v1972_v44 = vpop.eup %1971 }
0x15b7   :  { %787 = vrot.lane.b32.xlu0 %v1972_v44, %s2063_s26 }
0x1629   :  { %v788_v46 = vpop.permute.xlu0 %787 }
0x162a   :  { %v790_v48 = vmul.f32 %v788_v46, %v785_v45 }
0x162c   :  { %v2344_v49 = vadd.f32 %v791_v47, %v790_v48 }
0x162e   :  { %v793_v50 = vpack.c.bf16 %v2344_v49, %v2344_v49 }
0x1630   :  { %795 = vrot.lane.b32.xlu1 %v793_v50, %s2063_s26 }
0x1634   :  { %175 = vrot.lane.b32.xlu1 %v2174_v16, %s2063_s26 }
0x16a2   :  { %v796_v53 = vpop.permute.xlu1 %795 }
0x16a3   :  { %1810 = vmatmul.mubr.msk.bf16.vlgmr.msra.gmra.mrb[24].mxu1 %vm62_vm1, %v796_v53 }
0x16a4   :  { %1822 = vmatpush3.bf16.msra.mxu1 %v2354_v52  ;;  %1825 = vmatprep.mubr.msk.bf16.mxu1 %vm2061_vm0, %v2060_v1 }
0x16a5   :  { %1823 = vmatprep.subr.bf16.mxu1 %v2060_v1 }
0x16a8   :  { %1824 = vmatpush3.bf16.msra.mxu1 %v2361_v54 }
0x16a9   :  { %1837 = vmatprep.subr.bf16.mxu1 %v2060_v1 }
0x16ab   :  { %1826 = vmatmul.mubr.msk.bf16.vlgmr.msra.gmra.mrb[28].mxu1 %vm62_vm1, %v2143_v4  ;;  %v2378_v4 = vpop.permute.xlu1 %175 }
0x16ac   :  { %1838 = vmatpush3.bf16.msra.mxu1 %v2354_v52  ;;  %1841 = vmatprep.mubr.msk.bf16.mxu1 %vm2061_vm0, %v2060_v1  ;;  %v2387_v15 = vadd.f32 %v2378_v4, %v2194_v25  ;;  %v2395_v25 = vadd.f32 %v2378_v4, %v2196_v26 }
0x16ad   :  { %1839 = vmatprep.subr.bf16.mxu1 %v2060_v1 }
0x16b0   :  { %1840 = vmatpush3.bf16.msra.mxu1 %v2361_v54 }
0x16b1   :  { %1853 = vmatprep.subr.bf16.mxu1 %v2060_v1 }
0x1776   :  { %v834_v16 = vpop.f32.mrb[24].mxu1 }
0x1777   :  { %v847_v55 = vadd.f32 %v834_v16, %v2198_v29  ;;  %v1811_v56 = vpop.f32.mrb[25].mxu1  ;;  %v840_v5 = vadd.f32 %v834_v16, %v2205_v35 }
0x1778   :  { %v837_v58 = vpop.f32.mrb[26].mxu1 }
0x1779   :  { %849 = vrot.lane.b32.xlu0 %v847_v55, %s2064_s7  ;;  %v1812_v59 = vpop.f32.mrb[27].mxu1  ;;  %v1641_v6 = vmul.f32 -1.442695, %v840_v5 }
0x177b   :  { %1973 = vpow2.f32 %v1641_v6 }
0x177e   :  { %v987_v60 = vpop.f32.mrb[28].mxu1 }
0x177f   :  { %v1011_v61 = vadd.f32 %v987_v60, %v2378_v4  ;;  %994 = vrot.lane.b32.xlu0 %v987_v60, %s2063_s26  ;;  %v1827_v62 = vpop.f32.mrb[29].mxu1 }
0x1780   :  { %v990_v63 = vpop.f32.mrb[30].mxu1 }
0x1781   :  { %v1828_v2 = vpop.f32.mrb[31].mxu1 }
0x1783   :  { %1013 = vrot.lane.b32.xlu0 %v1011_v61, %s2065_s28 }
0x1785   :  { %v1974_v7 = vpop.eup %1973 }
0x1786   :  { %v844_v10 = vadd.f32 1.0, %v1974_v7 }
0x1788   :  { %1975 = vrcp.f32 %v844_v10 }
0x1792   :  { %v1976_v11 = vpop.eup %1975 }
0x1793   :  { %v859_v8 = vsub.f32 1.0, %v1976_v11  ;;  %v865_v38 = vmul.f32 %v1976_v11, %v2344_v49 }
0x17eb   :  { %v850_v12 = vpop.permute.xlu0 %849 }
0x17ec   :  { %v852_v13 = vmul.f32 %v1976_v11, %v850_v12 }
0x17ee   :  { %854 = vrot.lane.b32.xlu1 %v852_v13, %s2064_s7 }
0x17f1   :  { %v995_v17 = vpop.permute.xlu0 %994 }
0x17f2   :  { %v997_v18 = vadd.f32 %v995_v17, %v2387_v15  ;;  %v1004_v26 = vadd.f32 %v995_v17, %v2395_v25 }
0x17f4   :  { %v1647_v19 = vmul.f32 -1.442695, %v997_v18  ;;  %v1648_v42 = vmul.f32 -1.442695, %v1004_v26 }
0x17f5   :  { %v1014_v22 = vpop.permute.xlu0 %1013 }
0x17f6   :  { %1977 = vpow2.f32 %v1647_v19 }
0x1800   :  { %v1978_v20 = vpop.eup %1977 }
0x1801   :  { %v1001_v21 = vadd.f32 1.0, %v1978_v20 }
0x1803   :  { %1979 = vrcp.f32 %v1001_v21 }
0x180d   :  { %v1980_v24 = vpop.eup %1979 }
0x180e   :  { %v1016_v27 = vmul.f32 %v1980_v24, %v1014_v22 }
0x1810   :  { %1018 = vrot.lane.b32.xlu1 %v1016_v27, %s2064_s7 }
0x1860   :  { %v855_v28 = vpop.permute.xlu1 %854 }
0x1861   :  { %v857_v30 = vadd.f32 %v855_v28, %v2205_v35 }
0x1863   :  { %1981 = vtanh.f32 %v857_v30 }
0x186d   :  { %v1982_v31 = vpop.eup %1981 }
0x186e   :  { %861 = vrot.lane.b32.xlu0 %v1982_v31, %s2063_s26 }
0x1882   :  { %v1019_v33 = vpop.permute.xlu1 %1018 }
0x1883   :  { %v1021_v34 = vadd.f32 %v1019_v33, %v2395_v25 }
0x1885   :  { %1983 = vtanh.f32 %v1021_v34 }
0x1886   :  { %1985 = vpow2.f32 %v1648_v42 }
0x188f   :  { %v1984_v36 = vpop.eup %1983 }
0x1890   :  { %1025 = vrot.lane.b32.xlu0 %v1984_v36, %s2063_s26  ;;  %v1986_v43 = vpop.eup %1985 }
0x1891   :  { %v1008_v44 = vadd.f32 1.0, %v1986_v43 }
0x1893   :  { %1987 = vrcp.f32 %v1008_v44 }
0x189d   :  { %v1988_v45 = vpop.eup %1987 }
0x189e   :  { %v1023_v47 = vsub.f32 1.0, %v1988_v45  ;;  %v1029_v53 = vmul.f32 %v1988_v45, %v2138_v3 }
0x18e0   :  { %v862_v37 = vpop.permute.xlu0 %861 }
0x18e1   :  { %v864_v39 = vmul.f32 %v862_v37, %v859_v8 }
0x18e3   :  { %v2400_v40 = vadd.f32 %v865_v38, %v864_v39 }
0x18e5   :  { %v867_v9 = vpack.c.bf16 %v2400_v40, %v2400_v40 }
0x18e7   :  { %869 = vrot.lane.b32.xlu1 %v867_v9, %s2063_s26 }
0x1902   :  { %v1026_v46 = vpop.permute.xlu0 %1025 }
0x1903   :  { %v1028_v48 = vmul.f32 %v1026_v46, %v1023_v47 }
0x1905   :  { %v2411_v16 = vadd.f32 %v1029_v53, %v1028_v48 }
0x1907   :  { %v1032_v55 = vpack.c.bf16 %v2411_v16, %v2411_v16 }
0x1959   :  { %v870_v50 = vpop.permute.xlu1 %869 }
0x195a   :  { %1818 = vmatmul.mubr.msk.bf16.vlgmr.msra.gmra.mrb[16].mxu0 %vm62_vm1, %v870_v50 }
0x195b   :  { %1830 = vmatpush3.bf16.msra.mxu0 %v2354_v52  ;;  %1833 = vmatprep.mubr.msk.bf16.mxu0 %vm2061_vm0, %v2060_v1 }
0x195c   :  { %1831 = vmatprep.subr.bf16.mxu0 %v2060_v1 }
0x195f   :  { %1832 = vmatpush3.bf16.msra.mxu0 %v2361_v54 }
0x1960   :  { %1845 = vmatprep.subr.bf16.mxu0 %v2060_v1 }
0x1962   :  { %1834 = vmatmul.mubr.msk.bf16.vlgmr.msra.gmra.mrb[20].mxu0 %vm62_vm1, %v1032_v55 }
0x1963   :  { %1846 = vmatpush3.bf16.msra.mxu0 %v2354_v52  ;;  %1849 = vmatprep.mubr.msk.bf16.mxu0 %vm2061_vm0, %v2060_v1 }
0x1964   :  { %1847 = vmatprep.subr.bf16.mxu0 %v2060_v1 }
0x1967   :  { %1848 = vmatpush3.bf16.msra.mxu0 %v2361_v54 }
0x1968   :  { %1861 = vmatprep.subr.bf16.mxu0 %v2060_v1 }
0x1a2d   :  { %v2425_v3 = vpop.f32.mrb[16].mxu0 }
0x1a2e   :  { %v1819_v56 = vpop.f32.mrb[17].mxu0 }
0x1a2f   :  { %v911_v58 = vpop.f32.mrb[18].mxu0 }
0x1a30   :  { %v1820_v59 = vpop.f32.mrb[19].mxu0 }
0x1a35   :  { %v1070_v60 = vpop.f32.mrb[20].mxu0 }
0x1a36   :  { %v1094_v61 = vadd.f32 %v1070_v60, %v2378_v4  ;;  %1077 = vrot.lane.b32.xlu1 %v1070_v60, %s2063_s26  ;;  %v1835_v62 = vpop.f32.mrb[21].mxu0 }
0x1a37   :  { %v1073_v63 = vpop.f32.mrb[22].mxu0 }
0x1a38   :  { %1096 = vrot.lane.b32.xlu0 %v1094_v61, %s2065_s28  ;;  %v1836_v2 = vpop.f32.mrb[23].mxu0 }
0x1aa8   :  { %v1078_v5 = vpop.permute.xlu1 %1077 }
0x1aa9   :  { %v1080_v6 = vadd.f32 %v1078_v5, %v2387_v15  ;;  %v1087_v21 = vadd.f32 %v1078_v5, %v2395_v25 }
0x1aaa   :  { %v1097_v13 = vpop.permute.xlu0 %1096 }
0x1aab   :  { %v1650_v7 = vmul.f32 -1.442695, %v1080_v6  ;;  %v1651_v22 = vmul.f32 -1.442695, %v1087_v21 }
0x1aad   :  { %1989 = vpow2.f32 %v1650_v7 }
0x1ab7   :  { %v1990_v10 = vpop.eup %1989 }
0x1ab8   :  { %v1084_v11 = vadd.f32 1.0, %v1990_v10 }
0x1aba   :  { %1991 = vrcp.f32 %v1084_v11 }
0x1ac4   :  { %v1992_v12 = vpop.eup %1991 }
0x1ac5   :  { %v1099_v17 = vmul.f32 %v1992_v12, %v1097_v13 }
0x1ac7   :  { %1101 = vrot.lane.b32.xlu1 %v1099_v17, %s2064_s7 }
0x1b39   :  { %v1102_v18 = vpop.permute.xlu1 %1101 }
0x1b3a   :  { %v1104_v19 = vadd.f32 %v1102_v18, %v2395_v25 }
0x1b3c   :  { %1993 = vtanh.f32 %v1104_v19 }
0x1b3d   :  { %1995 = vpow2.f32 %v1651_v22 }
0x1b46   :  { %v1994_v20 = vpop.eup %1993 }
0x1b47   :  { %1108 = vrot.lane.b32.xlu0 %v1994_v20, %s2063_s26  ;;  %v1996_v24 = vpop.eup %1995 }
0x1b48   :  { %v1091_v27 = vadd.f32 1.0, %v1996_v24 }
0x1b4a   :  { %1997 = vrcp.f32 %v1091_v27 }
0x1b54   :  { %v1998_v28 = vpop.eup %1997 }
0x1b55   :  { %v1106_v30 = vsub.f32 1.0, %v1998_v28  ;;  %v1112_v33 = vmul.f32 %v1998_v28, %v2411_v16  ;;  %v921_v28 = vadd.f32 %v2425_v3, %v2198_v29 }
0x1bb9   :  { %v1109_v31 = vpop.permute.xlu0 %1108 }
0x1bba   :  { %v1111_v34 = vmul.f32 %v1109_v31, %v1106_v30 }
0x1bbc   :  { %v2436_v36 = vadd.f32 %v1112_v33, %v1111_v34 }
0x1bbe   :  { %v1115_v8 = vpack.c.bf16 %v2436_v36, %v2436_v36 }
0x1bc0   :  { %1842 = vmatmul.mubr.msk.bf16.vlgmr.msra.gmra.mrb[32].mxu1 %vm62_vm1, %v1115_v8 }
0x1bc1   :  { %1854 = vmatpush3.bf16.msra.mxu1 %v2354_v52  ;;  %1857 = vmatprep.mubr.msk.bf16.mxu1 %vm2061_vm0, %v2060_v1 }
0x1bc2   :  { %1855 = vmatprep.subr.bf16.mxu1 %v2060_v1 }
0x1bc5   :  { %1856 = vmatpush3.bf16.msra.mxu1 %v2361_v54 }
0x1bc6   :  { %1885 = vmatprep.subr.bf16.mxu1 %v2060_v1 }
0x1c93   :  { %v1153_v37 = vpop.f32.mrb[32].mxu1 }
0x1c94   :  { %v1177_v38 = vadd.f32 %v1153_v37, %v2378_v4  ;;  %1160 = vrot.lane.b32.xlu1 %v1153_v37, %s2063_s26  ;;  %v1843_v39 = vpop.f32.mrb[33].mxu1 }
0x1c95   :  { %v1156_v9 = vpop.f32.mrb[34].mxu1 }
0x1c96   :  { %1179 = vrot.lane.b32.xlu0 %v1177_v38, %s2065_s28  ;;  %v1844_v26 = vpop.f32.mrb[35].mxu1 }
0x1d06   :  { %v1161_v52 = vpop.permute.xlu1 %1160 }
0x1d07   :  { %v1163_v42 = vadd.f32 %v1161_v52, %v2387_v15  ;;  %v1170_v55 = vadd.f32 %v1161_v52, %v2395_v25 }
0x1d08   :  { %v1180_v46 = vpop.permute.xlu0 %1179 }
0x1d09   :  { %v1653_v43 = vmul.f32 -1.442695, %v1163_v42  ;;  %v1654_v56 = vmul.f32 -1.442695, %v1170_v55 }
0x1d0b   :  { %1999 = vpow2.f32 %v1653_v43  ;;  %v1921_v43 = vld [vmem:[%s2621_s6] sm:$0xff]  }
0x1d15   :  { %v2000_v44 = vpop.eup %1999 }
0x1d16   :  { %v1167_v45 = vadd.f32 1.0, %v2000_v44 }
0x1d18   :  { %2001 = vrcp.f32 %v1167_v45  ;;  %v1922_v45 = vld [vmem:[%s2621_s6 + $0x8] sm:$0xff]   ;;  %s1602_s6 = sshll.u32 %s2068_s15, 4  ;;  %s1603_s6 = int_to_ptr.vmem [resolvable:$true] %s1602_s6 }
0x1d19   :  { %s2036_s16 = scalar_lea.vmem %s1603_s6, 640  ;;  %p2041_p1 = scmp.lt.s32.totalorder %s1603_s6, %s1603_s6 }
0x1d1a   :  { %p2037_p0 = scmp.ne.s32.totalorder %s1603_s6, %s2036_s16  ;;  %p2042_p2 = scmp.lt.s32.totalorder %s2036_s16, %s2036_s16 }
0x1d1c   :  { %p2043_p3 = por %p2042_p2, %p2041_p1 }
0x1d1e   :  { %p2044_p4 = pnand %p2043_p3, %p2037_p0 }
0x1d22   :  { %v2002_v54 = vpop.eup %2001 }
0x1d23   :  { %v1182_v47 = vmul.f32 %v2002_v54, %v1180_v46  ;;  %v1114_v54 = vmax.f32 %v2436_v36, 0.0  ;;  %v1031_v46 = vmax.f32 %v2411_v16, 0.0 }
0x1d25   :  { %1184 = vrot.lane.b32.xlu1 %v1182_v47, %s2064_s7  ;;  %v1502_v47 = vpack.c.bf16 %v1114_v54, %v1031_v46 }
0x1d97   :  { %v1185_v48 = vpop.permute.xlu1 %1184 }
0x1d98   :  { %v1187_v50 = vadd.f32 %v1185_v48, %v2395_v25 }
0x1d9a   :  { %2003 = vtanh.f32 %v1187_v50 }
0x1d9b   :  { %2005 = vpow2.f32 %v1654_v56 }
0x1da4   :  { %v2004_v53 = vpop.eup %2003 }
0x1da5   :  { %1191 = vrot.lane.b32.xlu0 %v2004_v53, %s2063_s26  ;;  %v2006_v58 = vpop.eup %2005 }
0x1da6   :  { %v1174_v59 = vadd.f32 1.0, %v2006_v58 }
0x1da8   :  { %2007 = vrcp.f32 %v1174_v59 }
0x1db2   :  { %v2008_v60 = vpop.eup %2007 }
0x1db3   :  { %v1189_v61 = vsub.f32 1.0, %v2008_v60  ;;  %v1195_v63 = vmul.f32 %v2008_v60, %v2436_v36  ;;  %v914_v36 = vadd.f32 %v2425_v3, %v2205_v35 }
0x1db5   :  { %v1643_v16 = vmul.f32 -1.442695, %v914_v36 }
0x1e17   :  { %v1192_v62 = vpop.permute.xlu0 %1191 }
0x1e18   :  { %v1194_v2 = vmul.f32 %v1192_v62, %v1189_v61 }
0x1e1a   :  { %v1196_v5 = vadd.f32 %v1195_v63, %v1194_v2 }
0x1e1c   :  { %v1198_v6 = vpack.c.bf16 %v1196_v5, %v1196_v5  ;;  %v1197_v50 = vmax.f32 %v1196_v5, 0.0 }
0x1e1e   :  { %1850 = vmatmul.mubr.msk.bf16.vlgmr.msra.gmra.mrb[24].mxu0 %vm62_vm1, %v1198_v6 }
0x1e1f   :  { %1865 = vmatprep.mubr.msk.bf16.mxu0 %vm2061_vm0, %v2060_v1 }
0x1ef1   :  { %v1236_v7 = vpop.f32.mrb[24].mxu0 }
0x1ef2   :  { %v1260_v10 = vadd.f32 %v1236_v7, %v2378_v4  ;;  %1243 = vrot.lane.b32.xlu1 %v1236_v7, %s2063_s26  ;;  %v1851_v11 = vpop.f32.mrb[25].mxu0 }
0x1ef3   :  { %v1239_v12 = vpop.f32.mrb[26].mxu0 }
0x1ef4   :  { %1262 = vrot.lane.b32.xlu0 %v1260_v10, %s2065_s28  ;;  %v1852_v13 = vpop.f32.mrb[27].mxu0 }
0x1f64   :  { %v1244_v17 = vpop.permute.xlu1 %1243 }
0x1f65   :  { %v1246_v18 = vadd.f32 %v1244_v17, %v2387_v15  ;;  %v1253_v34 = vadd.f32 %v1244_v17, %v2395_v25 }
0x1f66   :  { %v1263_v24 = vpop.permute.xlu0 %1262 }
0x1f67   :  { %v1656_v19 = vmul.f32 -1.442695, %v1246_v18  ;;  %v1657_v8 = vmul.f32 -1.442695, %v1253_v34 }
0x1f69   :  { %2009 = vpow2.f32 %v1656_v19 }
0x1f73   :  { %v2010_v20 = vpop.eup %2009 }
0x1f74   :  { %v1250_v21 = vadd.f32 1.0, %v2010_v20 }
0x1f76   :  { %2011 = vrcp.f32 %v1250_v21 }
0x1f80   :  { %v2012_v22 = vpop.eup %2011 }
0x1f81   :  { %v1265_v27 = vmul.f32 %v2012_v22, %v1263_v24  ;;  %v1923_v22 = vld [vmem:[%s2620_s5] sm:$0xff]  }
0x1f82   :  { %1862 = vmatpush3.bf16.msra.mxu0 %v1923_v22 }
0x1f83   :  { %1267 = vrot.lane.b32.xlu1 %v1265_v27, %s2064_s7  ;;  %1863 = vmatprep.subr.bf16.mxu0 %v2060_v1 }
0x1f87   :  { %923 = vrot.lane.b32.xlu1 %v921_v28, %s2064_s7 }
0x1ff5   :  { %v1268_v30 = vpop.permute.xlu1 %1267 }
0x1ff6   :  { %v1270_v31 = vadd.f32 %v1268_v30, %v2395_v25  ;;  %v1367_v30 = vpack.c.bf16 %v2344_v49, %v2325_v23 }
0x1ff8   :  { %2013 = vtanh.f32 %v1270_v31 }
0x1ff9   :  { %2015 = vpow2.f32 %v1657_v8  ;;  %v924_v58 = vpop.permute.xlu1 %923  ;;  %v1364_v8 = vpack.c.bf16 %v2230_v14, %v2211_v51  ;;  %v2035_v51 = vld [vmem:[%s2623_s8] ss:$0 sm:$0xff]  ;;  %s2067_s8 = smov 108  }
0x2002   :  { %v2014_v33 = vpop.eup %2013 }
0x2003   :  { %1274 = vrot.lane.b32.xlu0 %v2014_v33, %s2063_s26  ;;  %v2016_v37 = vpop.eup %2015 }
0x2004   :  { %v1257_v38 = vadd.f32 1.0, %v2016_v37 }
0x2006   :  { %2017 = vrcp.f32 %v1257_v38 }
0x2007   :  { %2019 = vpow2.f32 %v1643_v16 }
0x2010   :  { %v2018_v39 = vpop.eup %2017 }
0x2011   :  { %v1272_v9 = vsub.f32 1.0, %v2018_v39  ;;  %v1278_v29 = vmul.f32 %v2018_v39, %v1196_v5  ;;  %v2020_v55 = vpop.eup %2019 }
0x2012   :  { %v918_v56 = vadd.f32 1.0, %v2020_v55 }
0x2014   :  { %2021 = vrcp.f32 %v918_v56 }
0x201e   :  { %v2022_v62 = vpop.eup %2021 }
0x201f   :  { %v926_v2 = vmul.f32 %v2022_v62, %v924_v58  ;;  %v939_v23 = vmul.f32 %v2022_v62, %v2400_v40 }
0x2075   :  { %v1275_v26 = vpop.permute.xlu0 %1274 }
0x2076   :  { %v1277_v52 = vmul.f32 %v1275_v26, %v1272_v9 }
0x2078   :  { %v2470_v42 = vadd.f32 %v1278_v29, %v1277_v52 }
0x207a   :  { %v1281_v44 = vpack.c.bf16 %v2470_v42, %v2470_v42  ;;  %v1280_v48 = vmax.f32 %v2470_v42, 0.0 }
0x207c   :  { %1858 = vmatmul.mubr.msk.bf16.vlgmr.msra.gmra.mrb[36].mxu1 %vm62_vm1, %v1281_v44  ;;  %v1503_v53 = vpack.c.bf16 %v1280_v48, %v1197_v50 }
0x207d   :  { %1886 = vmatpush3.bf16.msra.mxu1 %v1921_v43  ;;  %1889 = vmatprep.mubr.msk.bf16.mxu1 %vm2061_vm0, %v2060_v1 }
0x207e   :  { %1887 = vmatprep.subr.bf16.mxu1 %v2060_v1 }
0x2081   :  { %1888 = vmatpush3.bf16.msra.mxu1 %v1922_v45 }
0x2084   :  { %1890 = vmatmul.mubr.msk.bf16.vlgmr.msra.gmra.mrb[40].mxu1 %vm62_vm1, %v1502_v47 }
0x2085   :  { %1893 = vmatprep.mubr.msk.bf16.mxu1 %vm2061_vm0, %v2060_v1 }
0x208c   :  { %1894 = vmatmul.mubr.msk.bf16.gmra.mrb[44].mxu1 %vm62_vm1, %v1503_v53 }
0x208d   :  { %1897 = vmatprep.mubr.msk.bf16.mxu1 %vm2061_vm0, %v2060_v1 }
0x214f   :  { %v1319_v59 = vpop.f32.mrb[36].mxu1 }
0x2150   :  { %v1343_v60 = vadd.f32 %v1319_v59, %v2378_v4  ;;  %1326 = vrot.lane.b32.xlu0 %v1319_v59, %s2063_s26  ;;  %v1859_v61 = vpop.f32.mrb[37].mxu1 }
0x2151   :  { %v1322_v63 = vpop.f32.mrb[38].mxu1 }
0x2152   :  { %1345 = vrot.lane.b32.xlu1 %v1343_v60, %s2065_s28  ;;  %v1860_v5 = vpop.f32.mrb[39].mxu1 }
0x2154   :  { %928 = vrot.lane.b32.xlu0 %v926_v2, %s2064_s7 }
0x2157   :  { %v2499_v3 = vpop.f32.mrb[40].mxu1 }
0x2158   :  { %v1891_v6 = vpop.f32.mrb[41].mxu1 }
0x2159   :  { %v2501_v7 = vpop.f32.mrb[42].mxu1 }
0x215a   :  { %v1892_v10 = vpop.f32.mrb[43].mxu1 }
0x215f   :  { %v2503_v11 = vpop.f32.mrb[44].mxu1 }
0x2160   :  { %v1895_v4 = vpop.f32.mrb[45].mxu1 }
0x2161   :  { %v2505_v12 = vpop.f32.mrb[46].mxu1 }
0x2162   :  { %v1896_v13 = vpop.f32.mrb[47].mxu1 }
0x21c2   :  { %v1327_v17 = vpop.permute.xlu0 %1326 }
0x21c3   :  { %v1329_v18 = vadd.f32 %v1327_v17, %v2387_v15  ;;  %v1924_v15 = vld [vmem:[%s2620_s5 + $0x8] sm:$0xff]   ;;  %v1336_v52 = vadd.f32 %v1327_v17, %v2395_v25 }
0x21c4   :  { %1864 = vmatpush3.bf16.msra.mxu0 %v1924_v15  ;;  %v1346_v33 = vpop.permute.xlu1 %1345 }
0x21c5   :  { %v1659_v19 = vmul.f32 -1.442695, %v1329_v18  ;;  %v1660_v43 = vmul.f32 -1.442695, %v1336_v52 }
0x21c6   :  { %v929_v20 = vpop.permute.xlu0 %928 }
0x21c7   :  { %2023 = vpow2.f32 %v1659_v19  ;;  %v931_v21 = vadd.f32 %v929_v20, %v2205_v35  ;;  %v1365_v35 = vpack.c.bf16 %v2268_v0, %v2249_v41  ;;  %v1366_v41 = vpack.c.bf16 %v2306_v57, %v2287_v32 }
0x21c8   :  { %v933_v0 = vsub.f32 1.0, %v2022_v62 }
0x21c9   :  { %2025 = vtanh.f32 %v931_v21 }
0x21d1   :  { %v2024_v24 = vpop.eup %2023 }
0x21d2   :  { %v1333_v27 = vadd.f32 1.0, %v2024_v24 }
0x21d3   :  { %v2026_v28 = vpop.eup %2025 }
0x21d4   :  { %2027 = vrcp.f32 %v1333_v27  ;;  %935 = vrot.lane.b32.xlu0 %v2026_v28, %s2063_s26 }
0x21d8   :  { %1380 = vrot.lane.b32.xlu0 %v1365_v35, %s2063_s26 }
0x21dc   :  { %1384 = vrot.lane.b32.xlu0 %v1367_v30, %s2063_s26 }
0x21de   :  { %v2028_v31 = vpop.eup %2027 }
0x21df   :  { %v1348_v34 = vmul.f32 %v2028_v31, %v1346_v33 }
0x21e1   :  { %1350 = vrot.lane.b32.xlu1 %v1348_v34, %s2064_s7 }
0x21e5   :  { %1378 = vrot.lane.b32.xlu1 %v1364_v8, %s2063_s26 }
0x21e9   :  { %1382 = vrot.lane.b32.xlu1 %v1366_v41, %s2063_s26 }
0x2246   :  { %v936_v37 = vpop.permute.xlu0 %935 }
0x2247   :  { %v938_v49 = vmul.f32 %v936_v37, %v933_v0 }
0x2249   :  { %v940_v38 = vadd.f32 %v939_v23, %v938_v49 }
0x224a   :  { %v1381_v9 = vpop.permute.xlu0 %1380 }
0x224b   :  { %v1368_v39 = vpack.c.bf16 %v940_v38, %v2400_v40 }
0x224d   :  { %1386 = vrot.lane.b32.xlu0 %v1368_v39, %s2063_s26 }
0x224e   :  { %v1385_v29 = vpop.permute.xlu0 %1384 }
0x2251   :  { %1400 = vrot.lane.b32.xlu0 %v2035_v51, %s2066_s0 }
0x2253   :  { %v1351_v14 = vpop.permute.xlu1 %1350 }
0x2254   :  { %v1353_v32 = vadd.f32 %v1351_v14, %v2395_v25 }
0x2256   :  { %2029 = vtanh.f32 %v1353_v32 }
0x2257   :  { %v1379_v57 = vpop.permute.xlu1 %1378  ;;  %2031 = vpow2.f32 %v1660_v43 }
0x2258   :  { %1866 = vmatmul.mubr.msk.bf16.vlgmr.msra.gmra.mrb[28].mxu0 %vm62_vm1, %v1379_v57 }
0x2259   :  { %1869 = vmatprep.mubr.msk.bf16.mxu0 %vm2061_vm0, %v2060_v1 }
0x225b   :  { %v1383_v26 = vpop.permute.xlu1 %1382 }
0x2260   :  { %v2030_v40 = vpop.eup %2029  ;;  %1870 = vmatmul.mubr.msk.bf16.gmra.mrb[32].mxu0 %vm62_vm1, %v1381_v9 }
0x2261   :  { %1357 = vrot.lane.b32.xlu1 %v2030_v40, %s2063_s26  ;;  %1873 = vmatprep.mubr.msk.bf16.mxu0 %vm2061_vm0, %v2060_v1  ;;  %v2032_v44 = vpop.eup %2031 }
0x2262   :  { %v1340_v54 = vadd.f32 1.0, %v2032_v44 }
0x2264   :  { %2033 = vrcp.f32 %v1340_v54 }
0x2265   :  { %1521 = vrot.lane.b32.xlu1 %v2035_v51, %s2067_s8 }
0x2268   :  { %1874 = vmatmul.mubr.msk.bf16.gmra.mrb[36].mxu0 %vm62_vm1, %v1383_v26 }
0x2269   :  { %1877 = vmatprep.mubr.msk.bf16.mxu0 %vm2061_vm0, %v2060_v1 }
0x226e   :  { %v2034_v46 = vpop.eup %2033 }
0x226f   :  { %v1355_v47 = vsub.f32 1.0, %v2034_v46  ;;  %v1361_v50 = vmul.f32 %v2034_v46, %v2470_v42 }
0x2270   :  { %1878 = vmatmul.mubr.msk.bf16.gmra.mrb[40].mxu0 %vm62_vm1, %v1385_v29 }
0x2271   :  { %1881 = vmatprep.mubr.msk.bf16.mxu0 %vm2061_vm0, %v2060_v1 }
0x22bf   :  { %v1387_v45 = vpop.permute.xlu0 %1386 }
0x22c0   :  { %1882 = vmatmul.mubr.msk.bf16.gmra.mrb[44].mxu0 %vm62_vm1, %v1387_v45 }
0x22c3   :  { %v1401_v42 = vpop.permute.xlu0 %1400 }
0x22d3   :  { %v1358_v48 = vpop.permute.xlu1 %1357 }
0x22d4   :  { %v1360_v53 = vmul.f32 %v1358_v48, %v1355_v47 }
0x22d6   :  { %v1362_v36 = vadd.f32 %v1361_v50, %v1360_v53 }
0x22d7   :  { %v1522_v16 = vpop.permute.xlu1 %1521 }
0x22d8   :  { %v1363_v1 = vmax.f32 %v1362_v36, 0.0  ;;  %v1568_v25 = vadd.f32 %v2499_v3, %v1522_v16  ;;  %v1571_v55 = vadd.f32 %v2501_v7, %v1522_v16  ;;  %v1576_v56 = vadd.f32 %v2503_v11, %v1522_v16 }
0x22d9   :  { %v1579_v58 = vadd.f32 %v2505_v12, %v1522_v16 }
0x22da   :  { %v1504_v59 = vpack.c.bf16 %v1363_v1, %v1363_v1  ;;  %1590 = vst.msk [vmem:[#allocation2] sm:$0xff] %vm1589_vm3, %v1568_v25  ;;  %1591 = vst.msk [vmem:[#allocation2 + $0x8] sm:$0xff] %vm1589_vm3, %v1571_v55 }
0x22db   :  { %1592 = vst.msk [vmem:[#allocation2 + $0x10] sm:$0xff] %vm1589_vm3, %v1576_v56  ;;  %1593 = vst.msk [vmem:[#allocation2 + $0x18] sm:$0xff] %vm1589_vm3, %v1579_v58 }
0x22dc   :  { %1898 = vmatmul.mubr.msk.bf16.gmra.mrb[48].mxu1 %vm62_vm1, %v1504_v59 }
0x232b   :  { %v1452_v60 = vpop.f32.mrb[28].mxu0 }
0x232c   :  { %v1453_v61 = vadd.f32 %v1452_v60, %v1401_v42  ;;  %v1867_v62 = vpop.f32.mrb[29].mxu0 }
0x232d   :  { %v1455_v63 = vpop.f32.mrb[30].mxu0 }
0x232e   :  { %1492 = vst.msk [vmem:[%s2624_s9] sm:$0xff] %vm1491_vm4, %v1453_v61  ;;  %v1456_v2 = vadd.f32 %v1455_v63, %v1401_v42  ;;  %v1868_v5 = vpop.f32.mrb[31].mxu0 }
0x2330   :  { %1493 = vst.msk [vmem:[%s2624_s9 + $0x8] sm:$0xff] %vm1491_vm4, %v1456_v2 }
0x2333   :  { %v1460_v3 = vpop.f32.mrb[32].mxu0 }
0x2334   :  { %v1461_v6 = vadd.f32 %v1460_v3, %v1401_v42  ;;  %v1871_v7 = vpop.f32.mrb[33].mxu0 }
0x2335   :  { %v1463_v10 = vpop.f32.mrb[34].mxu0 }
0x2336   :  { %1494 = vst.msk [vmem:[%s2624_s9 + $0x10] sm:$0xff] %vm1491_vm4, %v1461_v6  ;;  %v1464_v11 = vadd.f32 %v1463_v10, %v1401_v42  ;;  %v1872_v4 = vpop.f32.mrb[35].mxu0 }
0x2338   :  { %1495 = vst.msk [vmem:[%s2624_s9 + $0x18] sm:$0xff] %vm1491_vm4, %v1464_v11 }
0x233b   :  { %v1468_v12 = vpop.f32.mrb[36].mxu0 }
0x233c   :  { %v1469_v13 = vadd.f32 %v1468_v12, %v1401_v42  ;;  %v1875_v17 = vpop.f32.mrb[37].mxu0 }
0x233d   :  { %v1471_v18 = vpop.f32.mrb[38].mxu0 }
0x233e   :  { %1496 = vst.msk [vmem:[%s2624_s9 + $0x20] sm:$0xff] %vm1491_vm4, %v1469_v13  ;;  %v1472_v19 = vadd.f32 %v1471_v18, %v1401_v42  ;;  %v1876_v20 = vpop.f32.mrb[39].mxu0 }
0x2340   :  { %1497 = vst.msk [vmem:[%s2624_s9 + $0x28] sm:$0xff] %vm1491_vm4, %v1472_v19 }
0x2343   :  { %v1476_v21 = vpop.f32.mrb[40].mxu0 }
0x2344   :  { %v1477_v22 = vadd.f32 %v1476_v21, %v1401_v42  ;;  %v1879_v24 = vpop.f32.mrb[41].mxu0 }
0x2345   :  { %v1479_v27 = vpop.f32.mrb[42].mxu0 }
0x2346   :  { %1498 = vst.msk [vmem:[%s2624_s9 + $0x30] sm:$0xff] %vm1491_vm4, %v1477_v22  ;;  %v1480_v28 = vadd.f32 %v1479_v27, %v1401_v42  ;;  %v1880_v15 = vpop.f32.mrb[43].mxu0 }
0x2348   :  { %1499 = vst.msk [vmem:[%s2624_s9 + $0x38] sm:$0xff] %vm1491_vm4, %v1480_v28 }
0x2393   :  { %v1484_v35 = vpop.f32.mrb[44].mxu0 }
0x2394   :  { %v1485_v30 = vadd.f32 %v1484_v35, %v1401_v42  ;;  %v1883_v31 = vpop.f32.mrb[45].mxu0 }
0x2395   :  { %v1487_v33 = vpop.f32.mrb[46].mxu0 }
0x2396   :  { %1500 = vst.msk [vmem:[%s2624_s9 + $0x40] sm:$0xff] %vm1491_vm4, %v1485_v30  ;;  %v1488_v34 = vadd.f32 %v1487_v33, %v1401_v42  ;;  %v1884_v8 = vpop.f32.mrb[47].mxu0 }
0x2398   :  { %1501 = vst.msk [vmem:[%s2624_s9 + $0x48] sm:$0xff] %vm1491_vm4, %v1488_v34 }
0x23af   :  { %v1583_v41 = vpop.f32.mrb[48].mxu1 }
0x23b0   :  { %v1584_v0 = vadd.f32 %v1583_v41, %v1522_v16  ;;  %v1899_v37 = vpop.f32.mrb[49].mxu1 }
0x23b1   :  { %v1586_v23 = vpop.f32.mrb[50].mxu1 }
0x23b2   :  { %1594 = vst.msk [vmem:[#allocation2 + $0x20] sm:$0xff] %vm1589_vm3, %v1584_v0  ;;  %v1900_v49 = vpop.f32.mrb[51].mxu1 }
0x23b3   :  { %2047 = shalt.err (!%p2044_p4)
}
0x23b4   :  { %s2048_s9 = scalar_lea.hbm %s2625_s10, 640 }
0x23b5   :  { %p2049_p5 = scmp.ne.s32.totalorder %s2625_s10, %s2048_s9  ;;  %p2052_p6 = scmp.lt.u32.totalorder %s2048_s9, %s2625_s10 }
0x23b7   :  { %p2054_p7 = pnand %p2052_p6, %p2049_p5 }
0x23b9   :  { %2057 = shalt.err (!%p2054_p7)
}
0x23ba   :  { %s2069_s19 = smov 128   ;;  %s2070_s20 = smov 8  }
0x23bb   :  { %1608 = dma.vmem_to_hbm [thread:$0]  %s1603_s6, 640, %s2625_s10, [#allocation3], %s2069_s19, %s2069_s19, %s2070_s20  }
0x23bc   :  { %2058 = dma.done.wait [#allocation3], 640  }
0x23bd   :  { %2059 = vsyncadd [#allocation3], 4294966656 }
0x23be   :  { %1614 = vsyncpa [#allocation3], 1 }

</bundles_post_ra>
